<compile_context>
chip_gen: v5e
topology: v5e:2x2
jax: 0.10.0
libtpu: 0.0.40
codegen_flags: <defaults>
</compile_context>

<pallas_src>
import jax
import jax.numpy as jnp
from jax.experimental import pallas as pl
from jax.experimental.pallas import tpu as pltpu

# TODO(synk): in_features comes from pd.read_csv('test.csv') in the original
# script; file I/O is not allowed here, so it is fixed to 16.
IN_FEATURES = 16
HIDDEN = 100
OUT_FEATURES = 1

HIDDEN_PAD = 128          # 100 -> 128 lane-dense hidden width (zero padded, exact)
TILE_B = 512              # batch rows per grid step (sweep 512-2048 on large batches)

# bf16 weight-slab layout; all row offsets are multiples of 16 (bf16 tile = (16,128))
W0_OFF = 0                              # (IN_FEATURES, 128)
W1_OFF = W0_OFF + IN_FEATURES           # 16,  (128, 128)
W2_OFF = W1_OFF + HIDDEN_PAD            # 144, (128, 128)
W_ROWS = W2_OFF + HIDDEN_PAD            # 272

# f32 aux block (8,128): rows 0..2 = b0..b2 (padded), row 3 = w3^T (padded),
# row 4 = b3 replicated across lanes.
AUX_ROWS = 8


def mlp_kernel(x_ref, w_ref, aux_ref, o_ref):
    # x_ref: (TILE_B, IN_FEATURES) f32   w_ref: (W_ROWS, 128) bf16
    # aux_ref: (8, 128) f32              o_ref: (TILE_B, 1) f32
    x = x_ref[...].astype(jnp.bfloat16)

    w0 = w_ref[W0_OFF:W0_OFF + IN_FEATURES, :]     # (16, 128)  bf16
    w1 = w_ref[W1_OFF:W1_OFF + HIDDEN_PAD, :]      # (128, 128) bf16
    w2 = w_ref[W2_OFF:W2_OFF + HIDDEN_PAD, :]      # (128, 128) bf16

    b0 = aux_ref[0:1, :]
    b1 = aux_ref[1:2, :]
    b2 = aux_ref[2:3, :]
    w3_row = aux_ref[3:4, :]          # transposed layer-3 weights, f32
    b3 = aux_ref[4:5, 0:1]            # layer-3 bias as (1, 1)

    # L0 + ReLU   (bf16 operands, f32 accumulate)
    h = jnp.dot(x, w0, preferred_element_type=jnp.float32) + b0
    h = jnp.maximum(h, 0.0)
    # L1 + Tanh
    h = jnp.dot(h.astype(jnp.bfloat16), w1, preferred_element_type=jnp.float32) + b1
    h = jnp.tanh(h)
    # L2 + ReLU
    h = jnp.dot(h.astype(jnp.bfloat16), w2, preferred_element_type=jnp.float32) + b2
    h = jnp.maximum(h, 0.0)
    # L3 (hidden -> 1): VPU multiply + XLU lane reduce instead of a 128-wide matmul.
    out = jnp.sum(h * w3_row, axis=-1, keepdims=True) + b3
    o_ref[...] = out.astype(o_ref.dtype)


def _round_up(n, m):
    return ((n + m - 1) // m) * m


def mlp_forward(x, weight_slab, aux):
    """x: (B, IN_FEATURES) f32; weight_slab: (W_ROWS,128) bf16; aux: (8,128) f32."""
    B = x.shape[0]
    tile_b = min(TILE_B, _round_up(B, 8))   # small batches: one sublane-aligned tile
    num_tiles = pl.cdiv(B, tile_b)          # partial last block: OOB reads undefined,
                                            # OOB writes discarded (no wrapper pad)
    return pl.pallas_call(
        mlp_kernel,
        out_shape=jax.ShapeDtypeStruct((B, OUT_FEATURES), jnp.float32),
        grid_spec=pltpu.PrefetchScalarGridSpec(
            num_scalar_prefetch=0,
            grid=(num_tiles,),
            in_specs=[
                pl.BlockSpec((tile_b, IN_FEATURES), lambda i: (i, 0)),
                # constant index_maps -> params stay resident in VMEM across steps
                pl.BlockSpec((W_ROWS, HIDDEN_PAD), lambda i: (0, 0)),
                pl.BlockSpec((AUX_ROWS, HIDDEN_PAD), lambda i: (0, 0)),
            ],
            out_specs=pl.BlockSpec((tile_b, OUT_FEATURES), lambda i: (i, 0)),
        ),
        compiler_params=pltpu.CompilerParams(
            dimension_semantics=("parallel",),   # v7x: both TensorCores split the batch
        ),
    )(x, weight_slab, aux)


def init_params(key):
    """PyTorch nn.Linear-style init (uniform +/- 1/sqrt(fan_in)), unpadded f32."""
    dims = [(IN_FEATURES, HIDDEN), (HIDDEN, HIDDEN),
            (HIDDEN, HIDDEN), (HIDDEN, OUT_FEATURES)]
    params = []
    for fan_in, fan_out in dims:
        key, kw, kb = jax.random.split(key, 3)
        bound = 1.0 / (float(fan_in) ** 0.5)
        w = jax.random.uniform(kw, (fan_in, fan_out), jnp.float32, -bound, bound)
        b = jax.random.uniform(kb, (fan_out,), jnp.float32, -bound, bound)
        params += [w, b]
    return tuple(params)


def pack_params(params):
    """Zero-pad to lane width 128; W0|W1|W2 -> bf16 slab; biases + w3^T -> f32 aux."""
    w0, b0, w1, b1, w2, b2, w3, b3 = params
    ph = HIDDEN_PAD - HIDDEN
    w0p = jnp.pad(w0, ((0, 0), (0, ph)))
    w1p = jnp.pad(w1, ((0, ph), (0, ph)))
    w2p = jnp.pad(w2, ((0, ph), (0, ph)))
    weight_slab = jnp.concatenate([w0p, w1p, w2p], axis=0).astype(jnp.bfloat16)  # (272,128)

    aux = jnp.zeros((AUX_ROWS, HIDDEN_PAD), jnp.float32)
    aux = aux.at[0, :HIDDEN].set(b0)
    aux = aux.at[1, :HIDDEN].set(b1)
    aux = aux.at[2, :HIDDEN].set(b2)
    aux = aux.at[3, :HIDDEN].set(w3[:, 0])     # w3^T row, kept f32 for the VPU epilogue
    aux = aux.at[4, :].set(b3[0])              # b3 replicated across lanes
    return weight_slab, aux


def reference_forward_f32(x, params):
    """Exact f32 equivalent of the PyTorch module."""
    w0, b0, w1, b1, w2, b2, w3, b3 = params
    h = jnp.maximum(x @ w0 + b0, 0.0)
    h = jnp.tanh(h @ w1 + b1)
    h = jnp.maximum(h @ w2 + b2, 0.0)
    return h @ w3 + b3


def reference_forward_bf16(x, params):
    """Same math as the kernel (bf16 matmul operands, f32 accumulate/epilogue)."""
    w0, b0, w1, b1, w2, b2, w3, b3 = params
    bf = jnp.bfloat16
    h = jnp.maximum(jnp.dot(x.astype(bf), w0.astype(bf),
                            preferred_element_type=jnp.float32) + b0, 0.0)
    h = jnp.tanh(jnp.dot(h.astype(bf), w1.astype(bf),
                         preferred_element_type=jnp.float32) + b1)
    h = jnp.maximum(jnp.dot(h.astype(bf), w2.astype(bf),
                            preferred_element_type=jnp.float32) + b2, 0.0)
    return jnp.sum(h * w3[:, 0][None, :], axis=-1, keepdims=True) + b3


if __name__ == "__main__":
    BATCH = 1000   # exercises a partial last block (no wrapper pad) + a 2-step parallel grid
    key = jax.random.PRNGKey(0)
    key, kx = jax.random.split(key)
    x = jax.random.normal(kx, (BATCH, IN_FEATURES), dtype=jnp.float32)

    params = init_params(key)
    weight_slab, aux = pack_params(params)

    out = mlp_forward(x, weight_slab, aux)
    jax.block_until_ready(out)
    assert out.shape == (BATCH, OUT_FEATURES)

    # Tight check: kernel matches its own math (bf16 operands, f32 accumulate).
    ref_bf16 = reference_forward_bf16(x, params)
    assert jnp.allclose(out, ref_bf16, atol=5e-3, rtol=5e-3), \
        float(jnp.max(jnp.abs(out - ref_bf16)))

    # Loose check vs. the exact f32 module forward (documented bf16 tradeoff).
    ref_f32 = reference_forward_f32(x, params)
    assert float(jnp.max(jnp.abs(out - ref_f32))) < 1e-1, \
        float(jnp.max(jnp.abs(out - ref_f32)))

    print("KERNEL_OK")
</pallas_src>

<mosaic_0001>
module attributes {stable_mosaic.version = 11 : i64} {
  func.func @mlp_kernel(%arg0: i32, %arg1: memref<512x16xf32, #tpu.memory_space<vmem>>, %arg2: memref<272x128xbf16, #tpu.memory_space<vmem>>, %arg3: memref<8x128xf32, #tpu.memory_space<vmem>>, %arg4: memref<512x1xf32, #tpu.memory_space<vmem>>) attributes {dimension_semantics = [#tpu.dimension_semantics<parallel>], iteration_bounds = array<i64: 2>, scalar_prefetch = 0 : i64, scratch_operands = 0 : i64, tpu.core_type = #tpu.core_type<tc>, window_params = [{transform_indices = @transform_0, window_bounds = array<i64: 512, 16>}, {pipeline_mode = #tpu.pipeline_mode<synchronous>, transform_indices = @transform_1, window_bounds = array<i64: 272, 128>}, {pipeline_mode = #tpu.pipeline_mode<synchronous>, transform_indices = @transform_2, window_bounds = array<i64: 8, 128>}, {transform_indices = @transform_3, window_bounds = array<i64: 512, 1>}]} {
    %c0 = arith.constant 0 : index
    %c0_0 = arith.constant 0 : index
    %0 = vector.load %arg1[%c0, %c0_0] : memref<512x16xf32, #tpu.memory_space<vmem>>, vector<512x16xf32>
    %1 = arith.truncf %0 : vector<512x16xf32> to vector<512x16xbf16>
    %c0_1 = arith.constant 0 : index
    %c0_2 = arith.constant 0 : index
    %2 = vector.load %arg2[%c0_1, %c0_2] : memref<272x128xbf16, #tpu.memory_space<vmem>>, vector<16x128xbf16>
    %c16 = arith.constant 16 : index
    %c0_3 = arith.constant 0 : index
    %3 = vector.load %arg2[%c16, %c0_3] : memref<272x128xbf16, #tpu.memory_space<vmem>>, vector<128x128xbf16>
    %c144 = arith.constant 144 : index
    %c0_4 = arith.constant 0 : index
    %4 = vector.load %arg2[%c144, %c0_4] : memref<272x128xbf16, #tpu.memory_space<vmem>>, vector<128x128xbf16>
    %c0_5 = arith.constant 0 : index
    %c0_6 = arith.constant 0 : index
    %5 = vector.load %arg3[%c0_5, %c0_6] : memref<8x128xf32, #tpu.memory_space<vmem>>, vector<1x128xf32>
    %c1 = arith.constant 1 : index
    %c0_7 = arith.constant 0 : index
    %6 = vector.load %arg3[%c1, %c0_7] : memref<8x128xf32, #tpu.memory_space<vmem>>, vector<1x128xf32>
    %c2 = arith.constant 2 : index
    %c0_8 = arith.constant 0 : index
    %7 = vector.load %arg3[%c2, %c0_8] : memref<8x128xf32, #tpu.memory_space<vmem>>, vector<1x128xf32>
    %c3 = arith.constant 3 : index
    %c0_9 = arith.constant 0 : index
    %8 = vector.load %arg3[%c3, %c0_9] : memref<8x128xf32, #tpu.memory_space<vmem>>, vector<1x128xf32>
    %c4 = arith.constant 4 : index
    %c0_10 = arith.constant 0 : index
    %9 = vector.load %arg3[%c4, %c0_10] : memref<8x128xf32, #tpu.memory_space<vmem>>, vector<1x1xf32>
    %cst = arith.constant dense<0.000000e+00> : vector<512x128xf32>
    %10 = tpu.matmul %1, %2, %cst {dimension_numbers = #tpu.dot_dimension_numbers<[1], [0], [0], [1], [0, 0, 1, 1], [], []>} : vector<512x16xbf16>, vector<16x128xbf16>, vector<512x128xf32> -> vector<512x128xf32>
    %11 = vector.broadcast %5 : vector<1x128xf32> to vector<512x128xf32>
    %12 = arith.addf %10, %11 : vector<512x128xf32>
    %cst_11 = arith.constant 0.000000e+00 : f32
    %13 = vector.broadcast %cst_11 : f32 to vector<512x128xf32>
    %14 = arith.maximumf %12, %13 : vector<512x128xf32>
    %15 = arith.truncf %14 : vector<512x128xf32> to vector<512x128xbf16>
    %cst_12 = arith.constant dense<0.000000e+00> : vector<512x128xf32>
    %16 = tpu.matmul %15, %3, %cst_12 {dimension_numbers = #tpu.dot_dimension_numbers<[1], [0], [0], [1], [0, 0, 1, 1], [], []>} : vector<512x128xbf16>, vector<128x128xbf16>, vector<512x128xf32> -> vector<512x128xf32>
    %17 = vector.broadcast %6 : vector<1x128xf32> to vector<512x128xf32>
    %18 = arith.addf %16, %17 : vector<512x128xf32>
    %19 = math.tanh %18 : vector<512x128xf32>
    %20 = arith.truncf %19 : vector<512x128xf32> to vector<512x128xbf16>
    %cst_13 = arith.constant dense<0.000000e+00> : vector<512x128xf32>
    %21 = tpu.matmul %20, %4, %cst_13 {dimension_numbers = #tpu.dot_dimension_numbers<[1], [0], [0], [1], [0, 0, 1, 1], [], []>} : vector<512x128xbf16>, vector<128x128xbf16>, vector<512x128xf32> -> vector<512x128xf32>
    %22 = vector.broadcast %7 : vector<1x128xf32> to vector<512x128xf32>
    %23 = arith.addf %21, %22 : vector<512x128xf32>
    %cst_14 = arith.constant 0.000000e+00 : f32
    %24 = vector.broadcast %cst_14 : f32 to vector<512x128xf32>
    %25 = arith.maximumf %23, %24 : vector<512x128xf32>
    %26 = vector.broadcast %8 : vector<1x128xf32> to vector<512x128xf32>
    %27 = arith.mulf %25, %26 : vector<512x128xf32>
    %cst_15 = arith.constant dense<0.000000e+00> : vector<512xf32>
    %28 = vector.multi_reduction <add>, %27, %cst_15 [1] : vector<512x128xf32> to vector<512xf32>
    %29 = vector.shape_cast %28 : vector<512xf32> to vector<512x1xf32>
    %30 = vector.broadcast %9 : vector<1x1xf32> to vector<512x1xf32>
    %31 = arith.addf %29, %30 : vector<512x1xf32>
    %c0_16 = arith.constant 0 : index
    %c0_17 = arith.constant 0 : index
    %32 = vector.load %arg4[%c0_16, %c0_17] : memref<512x1xf32, #tpu.memory_space<vmem>>, vector<512x1xf32>
    tpu.vector_store %arg4[%c0_16, %c0_17], %31 {strides = array<i32>} : memref<512x1xf32, #tpu.memory_space<vmem>>, vector<512x1xf32>,
    return
  }
  func.func @transform_0(%arg0: i32) -> (i32, i32) {
    %c0_i32 = arith.constant 0 : i32
    %c0_i32_0 = arith.constant 0 : i32
    return %arg0, %c0_i32 : i32, i32
  }
  func.func @transform_1(%arg0: i32) -> (i32, i32) {
    %c0_i32 = arith.constant 0 : i32
    %c0_i32_0 = arith.constant 0 : i32
    %c0_i32_1 = arith.constant 0 : i32
    return %c0_i32, %c0_i32_0 : i32, i32
  }
  func.func @transform_2(%arg0: i32) -> (i32, i32) {
    %c0_i32 = arith.constant 0 : i32
    %c0_i32_0 = arith.constant 0 : i32
    %c0_i32_1 = arith.constant 0 : i32
    return %c0_i32, %c0_i32_0 : i32, i32
  }
  func.func @transform_3(%arg0: i32) -> (i32, i32) {
    %c0_i32 = arith.constant 0 : i32
    %c0_i32_0 = arith.constant 0 : i32
    return %arg0, %c0_i32 : i32, i32
  }
}

</mosaic_0001>

<bundles_post_ra>
// kernel: tpu_custom_call.1
= control target key start
LH: loop header
LB: loop body
LE: loop exit
PB: predicated region body
PF: predicated region fallthrough
CT: control target
= control target key end

     0   :  { %s2451_s12 = smov 0   ;;  %s2453_s13 = smov 0   ;;  %s3318_s0 = inlined_call_operand.vmem [shape: f32[1000,16], index: 0, kind: input, shape index: {}]   ;;  %s3319_s1 = inlined_call_operand.vmem [shape: bf16[272,128], index: 1, kind: input, shape index: {}]   ;;  %s3320_s2 = inlined_call_operand.vmem [shape: f32[8,128], index: 2, kind: input, shape index: {}]   ;;  %s3321_s3 = inlined_call_operand.vmem [shape: f32[1000,1], index: 3, kind: output, shape index: {}]  }
   0x1   :  { %s2455_s14 = smov 0  }
   0x2 LB: > { %s2464_s15 = sadd.s32 4294967295, %s2397_s14   ;;  %s2466_s16 = sadd.s32 1, %s2397_s14   ;;  %s2397_s14 = sphi %s2455_s14, %s3330_s14   ;;  %s2393_s13 = sphi %s2453_s13, %s3329_s13   ;;  %s2389_s12 = sphi %s2451_s12, %s3328_s12  }
   0x3   : > { %s85_s17 = ssub.s32 %s2397_s14, %s2466_s16  ;;  %s88_s18 = sadd.s32 1, %s2393_s13 }
   0x4   : > { %p86_p0 = scmp.eq.s32.totalorder %s85_s17, 0  ;;  %p98_p1 = scmp.ne.s32.totalorder %s2393_s13, %s2389_s12 }
   0x5   : > { %p99_p2 = scmp.eq.s32.totalorder %s2464_s15, 1  ;;  %p1959_p3 = scmp.ge.s32.totalorder %s2397_s14, 1 }
   0x6   : > { %s2474_s19 = scalar_select %p86_p0, %s2393_s13, %s88_s18  }
   0x7   : > { %p2476_p4 = por %p99_p2, %p98_p1  ;;  %p146_p5 = scmp.lt.s32.totalorder %s2397_s14, 3 }
   0x9   : > { %p147_p6 = pnand %p1959_p3, %p146_p5 }
   0xa   : > { %s2484_s23 = sshll.u32 (!%p147_p6), %s2464_s15, 6  ;;  %s170_s5 = sand.u32 (!%p147_p6), 1, %s2389_s12  }
   0xb   : > { %150 = sbr.rel (%p147_p6) target bundleno = 1139 (0x473), region = 32  ;;  %p178_p7 = scmp.lt.s32.totalorder (!%p147_p6), %s2484_s23, 124 }
   0xc   : > { %s1960_s8 = sshll.u32 (!%p147_p6), %s170_s5, 9 }
   0xd   : > { %s2823_s12 = scalar_lea.vmem (!%p147_p6), [#allocation2], %s1960_s8  }
  0x10   : > { %v2080_v0 = vld [vmem:[%s3319_s1] sm:$0xff]  ;;  %s179_s24 = scalar_select %p178_p7, %s2484_s23, 124  ;;  %vm335_vm0 = vcmask 130048   ;;  %v2087_v20 = vld [vmem:[%s3319_s1 + $0x38] sm:$0xff]  ;;  %v2086_v21 = vld [vmem:[%s3319_s1 + $0x30] sm:$0xff]  ;;  %vm1551_vm1 = vcmask 7168  }
  0x11   : > { %439 = vmatpush.bf16.msra.mxu0 %v2080_v0  ;;  %2100 = vmatpush.bf16.msra.mxu3 %v2080_v0  ;;  %v2088_v16 = vld [vmem:[%s3319_s1 + $0x40] sm:$0xff]  ;;  %v2085_v22 = vld [vmem:[%s3319_s1 + $0x28] sm:$0xff]  ;;  %v2083_v27 = vld [vmem:[%s3319_s1 + $0x18] sm:$0xff] }
  0x12   : > { %s1962_s25 = sshll.u32 %s179_s24, 3  ;;  %746 = vmatpush.bf16.msra.mxu1 %v2088_v16  ;;  %v2084_v25 = vld [vmem:[%s3319_s1 + $0x20] sm:$0xff]  ;;  %v2082_v28 = vld [vmem:[%s3319_s1 + $0x10] sm:$0xff]  ;;  %v2081_v29 = vld [vmem:[%s3319_s1 + $0x8] sm:$0xff]  ;;  %s1624_s24 = ssub.s32 (%p2476_p4), 125, %s2484_s23 }
  0x13   : > { %s2491_s28 = scalar_lea.vmem %s3318_s0, %s1962_s25  ;;  %v2546_v37 = vld [vmem:[%s3320_s2] ss:$0 sm:$0xff]  ;;  %s2097_s25 = sshll.u32 (%p2476_p4), %s2464_s15, 9 }
  0x14   : > { %v193_v1 = vld [vmem:[%s2491_s28] sm:$0xff]  ;;  %v194_v2 = vld [vmem:[%s2491_s28 + $0x8] sm:$0xff]  ;;  %v195_v4 = vld [vmem:[%s2491_s28 + $0x10] sm:$0xff]  ;;  %p1625_p8 = scmp.lt.s32.totalorder (%p2476_p4), %s1624_s24, 64  ;;  %s3183_s29 = scalar_lea.vmem (%p2476_p4), %s3321_s3, %s2097_s25  }
  0x15   : > { %v257_v3 = vpack.c.bf16 %v194_v2, %v193_v1  ;;  %v196_v5 = vld [vmem:[%s2491_s28 + $0x18] sm:$0xff]  ;;  %v197_v7 = vld [vmem:[%s2491_s28 + $0x20] sm:$0xff]  ;;  %v198_v8 = vld [vmem:[%s2491_s28 + $0x28] sm:$0xff]  ;;  %2101 = vmatpush.bf16.msrb.mxu3 %v2088_v16 }
  0x16   : > { %v258_v6 = vpack.c.bf16 %v196_v5, %v195_v4  ;;  %v259_v9 = vpack.c.bf16 %v198_v8, %v197_v7  ;;  %v199_v10 = vld [vmem:[%s2491_s28 + $0x30] sm:$0xff]  ;;  %v200_v11 = vld [vmem:[%s2491_s28 + $0x38] sm:$0xff]  ;;  %v201_v13 = vld [vmem:[%s2491_s28 + $0x40] sm:$0xff]  ;;  %747 = vmatpush.bf16.msra.mxu1 %v2087_v20 }
  0x17   : > { %1967 = vmatmul.msk.bf16.vlgmr.msra.gmra.mxu0 %vm335_vm0, %v257_v3  ;;  %v260_v12 = vpack.c.bf16 %v200_v11, %v199_v10  ;;  %v202_v14 = vld [vmem:[%s2491_s28 + $0x48] sm:$0xff]  ;;  %v203_v17 = vld [vmem:[%s2491_s28 + $0x50] sm:$0xff]  ;;  %v204_v18 = vld [vmem:[%s2491_s28 + $0x58] sm:$0xff] }
  0x18   : > { %v261_v15 = vpack.c.bf16 %v202_v14, %v201_v13  ;;  %v262_v19 = vpack.c.bf16 %v204_v18, %v203_v17  ;;  %v205_v23 = vld [vmem:[%s2491_s28 + $0x60] sm:$0xff]  ;;  %v206_v24 = vld [vmem:[%s2491_s28 + $0x68] sm:$0xff]  ;;  %v207_v30 = vld [vmem:[%s2491_s28 + $0x70] sm:$0xff] }
  0x19   : > { %2102 = vmatpush.bf16.msrb.mxu3 %v2087_v20  ;;  %v263_v26 = vpack.c.bf16 %v206_v24, %v205_v23  ;;  %v208_v31 = vld [vmem:[%s2491_s28 + $0x78] sm:$0xff]  ;;  %v209_v33 = vld [vmem:[%s2491_s28 + $0x80] sm:$0xff]  ;;  %v210_v34 = vld [vmem:[%s2491_s28 + $0x88] sm:$0xff] }
  0x1a   : > { %748 = vmatpush.bf16.msra.mxu1 %v2086_v21  ;;  %v264_v32 = vpack.c.bf16 %v208_v31, %v207_v30  ;;  %v265_v35 = vpack.c.bf16 %v210_v34, %v209_v33  ;;  %v211_v43 = vld [vmem:[%s2491_s28 + $0x90] sm:$0xff]  ;;  %v212_v44 = vld [vmem:[%s2491_s28 + $0x98] sm:$0xff]  ;;  %v213_v53 = vld [vmem:[%s2491_s28 + $0xa0] sm:$0xff] }
  0x1b   : > { %v266_v46 = vpack.c.bf16 %v212_v44, %v211_v43  ;;  %v214_v54 = vld [vmem:[%s2491_s28 + $0xa8] sm:$0xff]  ;;  %v215_v63 = vld [vmem:[%s2491_s28 + $0xb0] sm:$0xff]  ;;  %v216_v0 = vld [vmem:[%s2491_s28 + $0xb8] sm:$0xff] }
  0x1c   : > { %v267_v56 = vpack.c.bf16 %v214_v54, %v213_v53  ;;  %v268_v2 = vpack.c.bf16 %v216_v0, %v215_v63  ;;  %v218_v10 = vld [vmem:[%s2491_s28 + $0xc8] sm:$0xff]  ;;  %v220_v20 = vld [vmem:[%s2491_s28 + $0xd8] sm:$0xff]  ;;  %v2581_v33 = vld [vmem:[%s3319_s1 + $0x80] sm:$0xff] }
  0x1d   : > { %2103 = vmatpush.bf16.msrb.mxu3 %v2086_v21  ;;  %v222_v30 = vld [vmem:[%s2491_s28 + $0xe8] sm:$0xff]  ;;  %1060 = vmatpush.bf16.msra.mxu2 %v2581_v33  ;;  %v223_v44 = vld [vmem:[%s2491_s28 + $0xf0] sm:$0xff] }
  0x1e   : > { %749 = vmatpush.bf16.msra.mxu1 %v2085_v22  ;;  %v2602_v43 = vld [vmem:[%s3319_s1 + $0x68] sm:$0xff] }
  0x21   : > { %2104 = vmatpush.bf16.msrb.mxu3 %v2085_v22 }
  0x22   : > { %750 = vmatpush.bf16.msra.mxu1 %v2084_v25 }
  0x25   : > { %2105 = vmatpush.bf16.msrb.mxu3 %v2084_v25 }
  0x26   : > { %751 = vmatpush.bf16.msra.mxu1 %v2083_v27 }
  0x27   : > { %1968 = vmatmul.msk.bf16.gmra.mxu0 %vm335_vm0, %v258_v6 }
  0x29   : > { %2106 = vmatpush.bf16.msrb.mxu3 %v2083_v27 }
  0x2a   : > { %752 = vmatpush.bf16.msra.mxu1 %v2082_v28 }
  0x2d   : > { %2107 = vmatpush.bf16.msrb.mxu3 %v2082_v28 }
  0x2e   : > { %753 = vmatpush.bf16.msra.mxu1 %v2081_v29 }
  0x31   : > { %2108 = vmatpush.bf16.msrb.mxu3 %v2081_v29  ;;  %v221_v29 = vld [vmem:[%s2491_s28 + $0xe0] sm:$0xff] }
  0x37   : > { %1969 = vmatmul.msk.bf16.gmra.mxu0 %vm335_vm0, %v259_v9  ;;  %v217_v9 = vld [vmem:[%s2491_s28 + $0xc0] sm:$0xff] }
  0x47   : > { %1970 = vmatmul.msk.bf16.gmra.mxu0 %vm335_vm0, %v260_v12  ;;  %v269_v12 = vpack.c.bf16 %v218_v10, %v217_v9 }
  0x57   : > { %1971 = vmatmul.msk.bf16.gmra.mxu0 %vm335_vm0, %v261_v15 }
  0x67   : > { %1972 = vmatmul.msk.bf16.gmra.mxu0 %vm335_vm0, %v262_v19  ;;  %v219_v19 = vld [vmem:[%s2491_s28 + $0xd0] sm:$0xff] }
  0x68   : > { %v270_v22 = vpack.c.bf16 %v220_v20, %v219_v19 }
  0x77   : > { %1973 = vmatmul.msk.bf16.gmra.mxu0 %vm335_vm0, %v263_v26 }
  0x87   : > { %1974 = vmatmul.msk.bf16.gmra.mxu0 %vm335_vm0, %v264_v32  ;;  %v271_v32 = vpack.c.bf16 %v222_v30, %v221_v29 }
  0x94   : > { %v441_v36 = vpop.f32.mrf.mxu0 }
  0x95   : > { %v442_v38 = vadd.f32 %v2546_v37, %v441_v36 }
  0x97   : > { %1975 = vmatmul.msk.bf16.gmra.mxu0 %vm335_vm0, %v265_v35  ;;  %v601_v41 = vmax.f32 %v442_v38, 0.0  ;;  %v2588_v35 = vld [vmem:[%s3319_s1 + $0x78] sm:$0xff]  ;;  %v2595_v38 = vld [vmem:[%s3319_s1 + $0x70] sm:$0xff] }
  0x98   : > { %1061 = vmatpush.bf16.msra.mxu2 %v2588_v35 }
  0x9c   : > { %v443_v39 = vpop.f32.mrf.mxu0  ;;  %1062 = vmatpush.bf16.msra.mxu2 %v2595_v38 }
  0x9d   : > { %v444_v40 = vadd.f32 %v2546_v37, %v443_v39 }
  0x9f   : > { %v602_v42 = vmax.f32 %v444_v40, 0.0 }
  0xa0   : > { %1063 = vmatpush.bf16.msra.mxu2 %v2602_v43 }
  0xa1   : > { %v665_v45 = vpack.c.bf16 %v602_v42, %v601_v41 }
  0xa3   : > { %754 = vmatmul.bf16.vlgmr.msra.gmra.mxu1 %v665_v45  ;;  %v224_v45 = vld [vmem:[%s2491_s28 + $0xf8] sm:$0xff] }
  0xa4   : > { %v446_v47 = vpop.f32.mrf.mxu0 }
  0xa5   : > { %v447_v48 = vadd.f32 %v2546_v37, %v446_v47  ;;  %v272_v47 = vpack.c.bf16 %v224_v45, %v223_v44  ;;  %v232_v44 = vld [vmem:[%s2491_s28 + $0x138] sm:$0xff] }
  0xa7   : > { %1976 = vmatmul.msk.bf16.gmra.mxu0 %vm335_vm0, %v266_v46  ;;  %v603_v51 = vmax.f32 %v447_v48, 0.0  ;;  %v2610_v48 = vld [vmem:[%s3319_s1 + $0x60] sm:$0xff] }
  0xa8   : > { %1064 = vmatpush.bf16.msra.mxu2 %v2610_v48 }
  0xac   : > { %v448_v49 = vpop.f32.mrf.mxu0 }
  0xad   : > { %v449_v50 = vadd.f32 %v2546_v37, %v448_v49 }
  0xaf   : > { %v604_v52 = vmax.f32 %v449_v50, 0.0  ;;  %v2617_v50 = vld [vmem:[%s3319_s1 + $0x58] sm:$0xff] }
  0xb0   : > { %1065 = vmatpush.bf16.msra.mxu2 %v2617_v50 }
  0xb1   : > { %v666_v55 = vpack.c.bf16 %v604_v52, %v603_v51  ;;  %v2624_v52 = vld [vmem:[%s3319_s1 + $0x50] sm:$0xff] }
  0xb3   : > { %759 = vmatmul.bf16.gmra.mxu1 %v666_v55 }
  0xb4   : > { %v451_v57 = vpop.f32.mrf.mxu0  ;;  %1066 = vmatpush.bf16.msra.mxu2 %v2624_v52 }
  0xb5   : > { %v452_v58 = vadd.f32 %v2546_v37, %v451_v57  ;;  %v2631_v57 = vld [vmem:[%s3319_s1 + $0x48] sm:$0xff] }
  0xb7   : > { %1977 = vmatmul.msk.bf16.gmra.mxu0 %vm335_vm0, %v267_v56  ;;  %v605_v61 = vmax.f32 %v452_v58, 0.0  ;;  %v225_v58 = vld [vmem:[%s2491_s28 + $0x100] sm:$0xff] }
  0xb8   : > { %1067 = vmatpush.bf16.msra.mxu2 %v2631_v57 }
  0xbc   : > { %v453_v59 = vpop.f32.mrf.mxu0 }
  0xbd   : > { %v454_v60 = vadd.f32 %v2546_v37, %v453_v59  ;;  %v226_v59 = vld [vmem:[%s2491_s28 + $0x108] sm:$0xff] }
  0xbf   : > { %v606_v62 = vmax.f32 %v454_v60, 0.0 }
  0xc1   : > { %v667_v1 = vpack.c.bf16 %v606_v62, %v605_v61  ;;  %v273_v61 = vpack.c.bf16 %v226_v59, %v225_v58 }
  0xc3   : > { %764 = vmatmul.bf16.gmra.mxu1 %v667_v1 }
  0xc4   : > { %v456_v3 = vpop.f32.mrf.mxu0 }
  0xc5   : > { %v457_v4 = vadd.f32 %v2546_v37, %v456_v3 }
  0xc7   : > { %1978 = vmatmul.msk.bf16.gmra.mxu0 %vm335_vm0, %v268_v2  ;;  %v607_v7 = vmax.f32 %v457_v4, 0.0 }
  0xcc   : > { %v458_v5 = vpop.f32.mrf.mxu0 }
  0xcd   : > { %v459_v6 = vadd.f32 %v2546_v37, %v458_v5  ;;  %v227_v5 = vld [vmem:[%s2491_s28 + $0x110] sm:$0xff] }
  0xcf   : > { %v608_v8 = vmax.f32 %v459_v6, 0.0  ;;  %v228_v6 = vld [vmem:[%s2491_s28 + $0x118] sm:$0xff] }
  0xd0   : > { %v274_v9 = vpack.c.bf16 %v228_v6, %v227_v5 }
  0xd1   : > { %v668_v11 = vpack.c.bf16 %v608_v8, %v607_v7  ;;  %v2644_v8 = vld [vmem:[%s3320_s2 + $0x1] ss:$0 sm:$0xff] }
  0xd3   : > { %769 = vmatmul.bf16.gmra.mxu1 %v668_v11 }
  0xd4   : > { %v461_v13 = vpop.f32.mrf.mxu0 }
  0xd5   : > { %v462_v14 = vadd.f32 %v2546_v37, %v461_v13 }
  0xd7   : > { %1979 = vmatmul.msk.bf16.gmra.mxu0 %vm335_vm0, %v269_v12  ;;  %v609_v17 = vmax.f32 %v462_v14, 0.0 }
  0xdc   : > { %v463_v15 = vpop.f32.mrf.mxu0 }
  0xdd   : > { %v464_v16 = vadd.f32 %v2546_v37, %v463_v15 }
  0xdf   : > { %v610_v18 = vmax.f32 %v464_v16, 0.0 }
  0xe1   : > { %v669_v21 = vpack.c.bf16 %v610_v18, %v609_v17 }
  0xe3   : > { %774 = vmatmul.bf16.gmra.mxu1 %v669_v21  ;;  %v229_v21 = vld [vmem:[%s2491_s28 + $0x120] sm:$0xff] }
  0xe4   : > { %v466_v23 = vpop.f32.mrf.mxu0 }
  0xe5   : > { %v467_v24 = vadd.f32 %v2546_v37, %v466_v23 }
  0xe7   : > { %1980 = vmatmul.msk.bf16.gmra.mxu0 %vm335_vm0, %v270_v22  ;;  %v611_v27 = vmax.f32 %v467_v24, 0.0  ;;  %v230_v22 = vld [vmem:[%s2491_s28 + $0x128] sm:$0xff] }
  0xec   : > { %v468_v25 = vpop.f32.mrf.mxu0 }
  0xed   : > { %v469_v26 = vadd.f32 %v2546_v37, %v468_v25 }
  0xef   : > { %v612_v28 = vmax.f32 %v469_v26, 0.0  ;;  %v275_v26 = vpack.c.bf16 %v230_v22, %v229_v21 }
  0xf1   : > { %v670_v31 = vpack.c.bf16 %v612_v28, %v611_v27 }
  0xf3   : > { %779 = vmatmul.bf16.gmra.mxu1 %v670_v31 }
  0xf4   : > { %v471_v34 = vpop.f32.mrf.mxu0 }
  0xf5   : > { %v472_v36 = vadd.f32 %v2546_v37, %v471_v34 }
  0xf7   : > { %1981 = vmatmul.msk.bf16.gmra.mxu0 %vm335_vm0, %v271_v32  ;;  %v613_v41 = vmax.f32 %v472_v36, 0.0 }
  0xfc   : > { %v473_v39 = vpop.f32.mrf.mxu0 }
  0xfd   : > { %v474_v40 = vadd.f32 %v2546_v37, %v473_v39 }
  0xff   : > { %v614_v42 = vmax.f32 %v474_v40, 0.0 }
 0x101   : > { %v671_v46 = vpack.c.bf16 %v614_v42, %v613_v41  ;;  %v231_v42 = vld [vmem:[%s2491_s28 + $0x130] sm:$0xff] }
 0x103   : > { %784 = vmatmul.bf16.gmra.mxu1 %v671_v46 }
 0x104   : > { %v476_v49 = vpop.f32.mrf.mxu0 }
 0x105   : > { %v477_v51 = vadd.f32 %v2546_v37, %v476_v49  ;;  %v276_v49 = vpack.c.bf16 %v232_v44, %v231_v42 }
 0x107   : > { %1982 = vmatmul.msk.bf16.gmra.mxu0 %vm335_vm0, %v272_v47  ;;  %v615_v55 = vmax.f32 %v477_v51, 0.0 }
 0x10c   : > { %v478_v53 = vpop.f32.mrf.mxu0 }
 0x10d   : > { %v479_v54 = vadd.f32 %v2546_v37, %v478_v53 }
 0x10f   : > { %v616_v56 = vmax.f32 %v479_v54, 0.0 }
 0x111   : > { %v672_v60 = vpack.c.bf16 %v616_v56, %v615_v55 }
 0x113   : > { %789 = vmatmul.bf16.gmra.mxu1 %v672_v60 }
 0x114   : > { %v481_v62 = vpop.f32.mrf.mxu0 }
 0x115   : > { %v482_v63 = vadd.f32 %v2546_v37, %v481_v62 }
 0x117   : > { %1983 = vmatmul.msk.bf16.gmra.mxu0 %vm335_vm0, %v273_v61  ;;  %v617_v2 = vmax.f32 %v482_v63, 0.0 }
 0x11c   : > { %v483_v0 = vpop.f32.mrf.mxu0 }
 0x11d   : > { %v484_v1 = vadd.f32 %v2546_v37, %v483_v0  ;;  %v233_v0 = vld [vmem:[%s2491_s28 + $0x140] sm:$0xff] }
 0x11f   : > { %v618_v3 = vmax.f32 %v484_v1, 0.0  ;;  %v234_v1 = vld [vmem:[%s2491_s28 + $0x148] sm:$0xff] }
 0x120   : > { %v755_v4 = vpop.f32.mrf.mxu1  ;;  %v277_v5 = vpack.c.bf16 %v234_v1, %v233_v0  ;;  %v239_v0 = vld [vmem:[%s2491_s28 + $0x170] sm:$0xff]  ;;  %v240_v1 = vld [vmem:[%s2491_s28 + $0x178] sm:$0xff] }
 0x121   : > { %v673_v7 = vpack.c.bf16 %v618_v3, %v617_v2  ;;  %v756_v11 = vadd.f32 %v2644_v8, %v755_v4 }
 0x123   : > { %794 = vmatmul.bf16.gmra.mxu1 %v673_v7  ;;  %2210 = vtanh.f32 %v756_v11 }
 0x124   : > { %v486_v10 = vpop.f32.mrf.mxu0 }
 0x125   : > { %v487_v14 = vadd.f32 %v2546_v37, %v486_v10 }
 0x127   : > { %1984 = vmatmul.msk.bf16.gmra.mxu0 %vm335_vm0, %v274_v9  ;;  %v619_v17 = vmax.f32 %v487_v14, 0.0 }
 0x128   : > { %v757_v12 = vpop.f32.mrf.mxu1 }
 0x129   : > { %v758_v13 = vadd.f32 %v2644_v8, %v757_v12  ;;  %v2211_v19 = vpop.eup %2210 }
 0x12b   : > { %2212 = vtanh.f32 %v758_v13 }
 0x12c   : > { %v488_v15 = vpop.f32.mrf.mxu0 }
 0x12d   : > { %v489_v16 = vadd.f32 %v2546_v37, %v488_v15 }
 0x12f   : > { %v620_v18 = vmax.f32 %v489_v16, 0.0 }
 0x130   : > { %v760_v20 = vpop.f32.mrf.mxu1 }
 0x131   : > { %v2213_v23 = vpop.eup %2212  ;;  %v674_v24 = vpack.c.bf16 %v620_v18, %v619_v17  ;;  %v761_v28 = vadd.f32 %v2644_v8, %v760_v20  ;;  %v235_v18 = vld [vmem:[%s2491_s28 + $0x150] sm:$0xff] }
 0x132   : > { %v979_v25 = vpack.c.bf16 %v2213_v23, %v2211_v19  ;;  %v236_v19 = vld [vmem:[%s2491_s28 + $0x158] sm:$0xff] }
 0x133   : > { %799 = vmatmul.bf16.gmra.mxu1 %v674_v24  ;;  %2214 = vtanh.f32 %v761_v28  ;;  %v278_v23 = vpack.c.bf16 %v236_v19, %v235_v18  ;;  %v242_v18 = vld [vmem:[%s2491_s28 + $0x188] sm:$0xff] }
 0x134   : > { %v491_v27 = vpop.f32.mrf.mxu0  ;;  %1068 = vmatmul.bf16.vlgmr.msra.gmra.mxu2 %v979_v25 }
 0x135   : > { %v492_v31 = vadd.f32 %v2546_v37, %v491_v27 }
 0x137   : > { %1985 = vmatmul.msk.bf16.gmra.mxu0 %vm335_vm0, %v275_v26  ;;  %v621_v36 = vmax.f32 %v492_v31, 0.0 }
 0x138   : > { %v762_v29 = vpop.f32.mrf.mxu1 }
 0x139   : > { %v763_v30 = vadd.f32 %v2644_v8, %v762_v29  ;;  %v2215_v40 = vpop.eup %2214 }
 0x13b   : > { %2216 = vtanh.f32 %v763_v30 }
 0x13c   : > { %v493_v32 = vpop.f32.mrf.mxu0 }
 0x13d   : > { %v494_v34 = vadd.f32 %v2546_v37, %v493_v32 }
 0x13f   : > { %v622_v39 = vmax.f32 %v494_v34, 0.0 }
 0x140   : > { %v765_v41 = vpop.f32.mrf.mxu1 }
 0x141   : > { %v2217_v45 = vpop.eup %2216  ;;  %v675_v46 = vpack.c.bf16 %v622_v39, %v621_v36  ;;  %v766_v53 = vadd.f32 %v2644_v8, %v765_v41  ;;  %v237_v39 = vld [vmem:[%s2491_s28 + $0x160] sm:$0xff] }
 0x142   : > { %v980_v47 = vpack.c.bf16 %v2217_v45, %v2215_v40  ;;  %v238_v40 = vld [vmem:[%s2491_s28 + $0x168] sm:$0xff] }
 0x143   : > { %804 = vmatmul.bf16.gmra.mxu1 %v675_v46  ;;  %2218 = vtanh.f32 %v766_v53  ;;  %v279_v45 = vpack.c.bf16 %v238_v40, %v237_v39 }
 0x144   : > { %v496_v51 = vpop.f32.mrf.mxu0  ;;  %1073 = vmatmul.bf16.gmra.mxu2 %v980_v47 }
 0x145   : > { %v497_v56 = vadd.f32 %v2546_v37, %v496_v51  ;;  %v244_v51 = vld [vmem:[%s2491_s28 + $0x198] sm:$0xff] }
 0x147   : > { %1986 = vmatmul.msk.bf16.gmra.mxu0 %vm335_vm0, %v276_v49  ;;  %v623_v60 = vmax.f32 %v497_v56, 0.0  ;;  %v243_v49 = vld [vmem:[%s2491_s28 + $0x190] sm:$0xff] }
 0x148   : > { %v767_v54 = vpop.f32.mrf.mxu1  ;;  %v282_v53 = vpack.c.bf16 %v244_v51, %v243_v49 }
 0x149   : > { %v768_v55 = vadd.f32 %v2644_v8, %v767_v54  ;;  %v2219_v62 = vpop.eup %2218 }
 0x14a   : > { %1992 = vmatmul.msk.bf16.vlgmr.msra.gmra.mxu3 %vm335_vm0, %v282_v53 }
 0x14b   : > { %2220 = vtanh.f32 %v768_v55  ;;  %2109 = vmatpush.bf16.msra.mxu3 %v2581_v33  ;;  %v280_v33 = vpack.c.bf16 %v240_v1, %v239_v0  ;;  %v251_v1 = vld [vmem:[%s2491_s28 + $0x1d0] sm:$0xff] }
 0x14c   : > { %v498_v58 = vpop.f32.mrf.mxu0 }
 0x14d   : > { %v499_v59 = vadd.f32 %v2546_v37, %v498_v58 }
 0x14f   : > { %v624_v61 = vmax.f32 %v499_v59, 0.0  ;;  %2110 = vmatpush.bf16.msra.mxu3 %v2588_v35  ;;  %v245_v35 = vld [vmem:[%s2491_s28 + $0x1a0] sm:$0xff] }
 0x150   : > { %v770_v63 = vpop.f32.mrf.mxu1 }
 0x151   : > { %v2221_v2 = vpop.eup %2220  ;;  %v676_v3 = vpack.c.bf16 %v624_v61, %v623_v60  ;;  %v771_v7 = vadd.f32 %v2644_v8, %v770_v63 }
 0x152   : > { %v981_v4 = vpack.c.bf16 %v2221_v2, %v2219_v62 }
 0x153   : > { %809 = vmatmul.bf16.gmra.mxu1 %v676_v3  ;;  %2222 = vtanh.f32 %v771_v7  ;;  %2111 = vmatpush.bf16.msra.mxu3 %v2595_v38  ;;  %v246_v7 = vld [vmem:[%s2491_s28 + $0x1a8] sm:$0xff] }
 0x154   : > { %v501_v6 = vpop.f32.mrf.mxu0  ;;  %1078 = vmatmul.bf16.gmra.mxu2 %v981_v4 }
 0x155   : > { %v502_v11 = vadd.f32 %v2546_v37, %v501_v6 }
 0x157   : > { %1987 = vmatmul.msk.bf16.gmra.mxu0 %vm335_vm0, %v277_v5  ;;  %v625_v14 = vmax.f32 %v502_v11, 0.0  ;;  %2112 = vmatpush.bf16.msra.mxu3 %v2602_v43 }
 0x158   : > { %v772_v9 = vpop.f32.mrf.mxu1 }
 0x159   : > { %v773_v10 = vadd.f32 %v2644_v8, %v772_v9  ;;  %v2223_v16 = vpop.eup %2222  ;;  %v283_v9 = vpack.c.bf16 %v246_v7, %v245_v35 }
 0x15b   : > { %2224 = vtanh.f32 %v773_v10  ;;  %1993 = vmatmul.msk.bf16.gmra.mxu3 %vm335_vm0, %v283_v9 }
 0x15c   : > { %v503_v12 = vpop.f32.mrf.mxu0  ;;  %2113 = vmatpush.bf16.msra.mxu3 %v2610_v48 }
 0x15d   : > { %v504_v13 = vadd.f32 %v2546_v37, %v503_v12 }
 0x15f   : > { %v626_v15 = vmax.f32 %v504_v13, 0.0 }
 0x160   : > { %v775_v17 = vpop.f32.mrf.mxu1  ;;  %2114 = vmatpush.bf16.msra.mxu3 %v2617_v50  ;;  %v247_v50 = vld [vmem:[%s2491_s28 + $0x1b0] sm:$0xff] }
 0x161   : > { %v2225_v20 = vpop.eup %2224  ;;  %v677_v21 = vpack.c.bf16 %v626_v15, %v625_v14  ;;  %v776_v25 = vadd.f32 %v2644_v8, %v775_v17  ;;  %v241_v17 = vld [vmem:[%s2491_s28 + $0x180] sm:$0xff] }
 0x162   : > { %v982_v22 = vpack.c.bf16 %v2225_v20, %v2223_v16  ;;  %v281_v48 = vpack.c.bf16 %v242_v18, %v241_v17 }
 0x163   : > { %814 = vmatmul.bf16.gmra.mxu1 %v677_v21  ;;  %2226 = vtanh.f32 %v776_v25 }
 0x164   : > { %v506_v24 = vpop.f32.mrf.mxu0  ;;  %1083 = vmatmul.bf16.gmra.mxu2 %v982_v22  ;;  %2115 = vmatpush.bf16.msra.mxu3 %v2624_v52 }
 0x165   : > { %v507_v28 = vadd.f32 %v2546_v37, %v506_v24  ;;  %v248_v24 = vld [vmem:[%s2491_s28 + $0x1b8] sm:$0xff] }
 0x166   : > { %v284_v25 = vpack.c.bf16 %v248_v24, %v247_v50  ;;  %v254_v50 = vld [vmem:[%s2491_s28 + $0x1e8] sm:$0xff] }
 0x167   : > { %1988 = vmatmul.msk.bf16.gmra.mxu0 %vm335_vm0, %v278_v23  ;;  %v627_v31 = vmax.f32 %v507_v28, 0.0 }
 0x168   : > { %v777_v26 = vpop.f32.mrf.mxu1  ;;  %2116 = vmatpush.bf16.msra.mxu3 %v2631_v57 }
 0x169   : > { %v778_v27 = vadd.f32 %v2644_v8, %v777_v26  ;;  %v2227_v34 = vpop.eup %2226 }
 0x16b   : > { %2228 = vtanh.f32 %v778_v27  ;;  %1994 = vmatmul.msk.bf16.gmra.mxu3 %vm335_vm0, %v284_v25 }
 0x16c   : > { %v508_v29 = vpop.f32.mrf.mxu0 }
 0x16d   : > { %v509_v30 = vadd.f32 %v2546_v37, %v508_v29 }
 0x16f   : > { %v628_v32 = vmax.f32 %v509_v30, 0.0 }
 0x170   : > { %v780_v36 = vpop.f32.mrf.mxu1 }
 0x171   : > { %v2229_v41 = vpop.eup %2228  ;;  %v678_v42 = vpack.c.bf16 %v628_v32, %v627_v31  ;;  %v781_v47 = vadd.f32 %v2644_v8, %v780_v36 }
 0x172   : > { %v983_v44 = vpack.c.bf16 %v2229_v41, %v2227_v34 }
 0x173   : > { %819 = vmatmul.bf16.gmra.mxu1 %v678_v42  ;;  %2230 = vtanh.f32 %v781_v47  ;;  %v249_v42 = vld [vmem:[%s2491_s28 + $0x1c0] sm:$0xff] }
 0x174   : > { %v511_v46 = vpop.f32.mrf.mxu0  ;;  %1088 = vmatmul.bf16.gmra.mxu2 %v983_v44  ;;  %v250_v44 = vld [vmem:[%s2491_s28 + $0x1c8] sm:$0xff] }
 0x175   : > { %v512_v56 = vadd.f32 %v2546_v37, %v511_v46 }
 0x177   : > { %1989 = vmatmul.msk.bf16.gmra.mxu0 %vm335_vm0, %v279_v45  ;;  %v629_v60 = vmax.f32 %v512_v56, 0.0  ;;  %v285_v45 = vpack.c.bf16 %v250_v44, %v249_v42 }
 0x178   : > { %v782_v54 = vpop.f32.mrf.mxu1 }
 0x179   : > { %v783_v55 = vadd.f32 %v2644_v8, %v782_v54  ;;  %v2231_v62 = vpop.eup %2230 }
 0x17b   : > { %2232 = vtanh.f32 %v783_v55  ;;  %1995 = vmatmul.msk.bf16.gmra.mxu3 %vm335_vm0, %v285_v45 }
 0x17c   : > { %v513_v58 = vpop.f32.mrf.mxu0 }
 0x17d   : > { %v514_v59 = vadd.f32 %v2546_v37, %v513_v58 }
 0x17f   : > { %v630_v61 = vmax.f32 %v514_v59, 0.0 }
 0x180   : > { %v785_v63 = vpop.f32.mrf.mxu1 }
 0x181   : > { %v2233_v2 = vpop.eup %2232  ;;  %v679_v3 = vpack.c.bf16 %v630_v61, %v629_v60  ;;  %v786_v6 = vadd.f32 %v2644_v8, %v785_v63  ;;  %v2727_v63 = vld [vmem:[%s3320_s2 + $0x2] ss:$0 sm:$0xff] }
 0x182   : > { %v984_v4 = vpack.c.bf16 %v2233_v2, %v2231_v62  ;;  %v252_v2 = vld [vmem:[%s2491_s28 + $0x1d8] sm:$0xff] }
 0x183   : > { %824 = vmatmul.bf16.gmra.mxu1 %v679_v3  ;;  %2234 = vtanh.f32 %v786_v6  ;;  %v2736_v6 = vld [vmem:[%s3320_s2 + $0x3] ss:$0 sm:$0xff] }
 0x184   : > { %v516_v5 = vpop.f32.mrf.mxu0  ;;  %1093 = vmatmul.bf16.gmra.mxu2 %v984_v4  ;;  %v286_v4 = vpack.c.bf16 %v252_v2, %v251_v1 }
 0x185   : > { %v517_v38 = vadd.f32 %v2546_v37, %v516_v5 }
 0x187   : > { %1990 = vmatmul.msk.bf16.gmra.mxu0 %vm335_vm0, %v280_v33  ;;  %v631_v43 = vmax.f32 %v517_v38, 0.0 }
 0x188   : > { %v787_v10 = vpop.f32.mrf.mxu1 }
 0x189   : > { %v788_v11 = vadd.f32 %v2644_v8, %v787_v10  ;;  %v2235_v15 = vpop.eup %2234 }
 0x18b   : > { %2236 = vtanh.f32 %v788_v11  ;;  %1996 = vmatmul.msk.bf16.gmra.mxu3 %vm335_vm0, %v286_v4 }
 0x18c   : > { %v518_v12 = vpop.f32.mrf.mxu0 }
 0x18d   : > { %v519_v13 = vadd.f32 %v2546_v37, %v518_v12 }
 0x18f   : > { %v632_v14 = vmax.f32 %v519_v13, 0.0 }
 0x190   : > { %v790_v16 = vpop.f32.mrf.mxu1 }
 0x191   : > { %v2237_v19 = vpop.eup %2236  ;;  %v680_v20 = vpack.c.bf16 %v632_v14, %v631_v43  ;;  %v791_v23 = vadd.f32 %v2644_v8, %v790_v16 }
 0x192   : > { %v985_v21 = vpack.c.bf16 %v2237_v19, %v2235_v15 }
 0x193   : > { %829 = vmatmul.bf16.gmra.mxu1 %v680_v20  ;;  %2238 = vtanh.f32 %v791_v23  ;;  %v253_v23 = vld [vmem:[%s2491_s28 + $0x1e0] sm:$0xff] }
 0x194   : > { %v521_v22 = vpop.f32.mrf.mxu0  ;;  %1098 = vmatmul.bf16.gmra.mxu2 %v985_v21  ;;  %v287_v25 = vpack.c.bf16 %v254_v50, %v253_v23 }
 0x195   : > { %v522_v52 = vadd.f32 %v2546_v37, %v521_v22 }
 0x197   : > { %1991 = vmatmul.msk.bf16.gmra.mxu0 %vm335_vm0, %v281_v48  ;;  %v633_v30 = vmax.f32 %v522_v52, 0.0 }
 0x198   : > { %v792_v26 = vpop.f32.mrf.mxu1 }
 0x199   : > { %v793_v27 = vadd.f32 %v2644_v8, %v792_v26  ;;  %v2239_v57 = vpop.eup %2238 }
 0x19b   : > { %2240 = vtanh.f32 %v793_v27  ;;  %1997 = vmatmul.msk.bf16.gmra.mxu3 %vm335_vm0, %v287_v25 }
 0x19c   : > { %v523_v28 = vpop.f32.mrf.mxu0 }
 0x19d   : > { %v524_v29 = vadd.f32 %v2546_v37, %v523_v28 }
 0x19f   : > { %v634_v31 = vmax.f32 %v524_v29, 0.0 }
 0x1a0   : > { %v795_v32 = vpop.f32.mrf.mxu1 }
 0x1a1   : > { %v2241_v34 = vpop.eup %2240  ;;  %v681_v36 = vpack.c.bf16 %v634_v31, %v633_v30  ;;  %v796_v41 = vadd.f32 %v2644_v8, %v795_v32 }
 0x1a2   : > { %v986_v39 = vpack.c.bf16 %v2241_v34, %v2239_v57 }
 0x1a3   : > { %834 = vmatmul.bf16.gmra.mxu1 %v681_v36  ;;  %2242 = vtanh.f32 %v796_v41 }
 0x1a4   : > { %v526_v40 = vpop.f32.mrf.mxu0  ;;  %1103 = vmatmul.bf16.gmra.mxu2 %v986_v39 }
 0x1a5   : > { %v527_v49 = vadd.f32 %v2546_v37, %v526_v40 }
 0x1a7   : > { %v635_v54 = vmax.f32 %v527_v49, 0.0 }
 0x1a8   : > { %v797_v46 = vpop.f32.mrf.mxu1 }
 0x1a9   : > { %v798_v47 = vadd.f32 %v2644_v8, %v797_v46  ;;  %v2243_v56 = vpop.eup %2242 }
 0x1ab   : > { %2244 = vtanh.f32 %v798_v47 }
 0x1ac   : > { %v528_v51 = vpop.f32.mrf.mxu0 }
 0x1ad   : > { %v529_v53 = vadd.f32 %v2546_v37, %v528_v51 }
 0x1af   : > { %v636_v55 = vmax.f32 %v529_v53, 0.0  ;;  %v255_v53 = vld [vmem:[%s2491_s28 + $0x1f0] sm:$0xff] }
 0x1b0   : > { %v800_v58 = vpop.f32.mrf.mxu1 }
 0x1b1   : > { %v2245_v59 = vpop.eup %2244  ;;  %v682_v60 = vpack.c.bf16 %v636_v55, %v635_v54  ;;  %v801_v0 = vadd.f32 %v2644_v8, %v800_v58  ;;  %v256_v54 = vld [vmem:[%s2491_s28 + $0x1f8] sm:$0xff] }
 0x1b2   : > { %v987_v61 = vpack.c.bf16 %v2245_v59, %v2243_v56  ;;  %v288_v56 = vpack.c.bf16 %v256_v54, %v255_v53 }
 0x1b3   : > { %839 = vmatmul.bf16.gmra.mxu1 %v682_v60  ;;  %2246 = vtanh.f32 %v801_v0 }
 0x1b4   : > { %v531_v62 = vpop.f32.mrf.mxu0  ;;  %1108 = vmatmul.bf16.gmra.mxu2 %v987_v61  ;;  %1998 = vmatmul.msk.bf16.gmra.mxu3 %vm335_vm0, %v288_v56 }
 0x1b5   : > { %v532_v9 = vadd.f32 %v2546_v37, %v531_v62 }
 0x1b7   : > { %v1069_v3 = vpop.f32.mrf.mxu2  ;;  %v637_v12 = vmax.f32 %v532_v9, 0.0 }
 0x1b8   : > { %v1070_v33 = vadd.f32 %v2727_v63, %v1069_v3  ;;  %v802_v5 = vpop.f32.mrf.mxu1 }
 0x1b9   : > { %v803_v35 = vadd.f32 %v2644_v8, %v802_v5  ;;  %v2247_v14 = vpop.eup %2246 }
 0x1ba   : > { %v1229_v7 = vmax.f32 %v1070_v33, 0.0 }
 0x1bb   : > { %2248 = vtanh.f32 %v803_v35 }
 0x1bc   : > { %v533_v10 = vpop.f32.mrf.mxu0  ;;  %v1294_v11 = vmul.f32 %v2736_v6, %v1229_v7 }
 0x1bd   : > { %v534_v38 = vadd.f32 %v2546_v37, %v533_v10 }
 0x1be   : > { %1358 = vadd.xlane.f32.xlu0 %v1294_v11 }
 0x1bf   : > { %v638_v13 = vmax.f32 %v534_v38, 0.0  ;;  %v1071_v43 = vpop.f32.mrf.mxu2 }
 0x1c0   : > { %v1072_v15 = vadd.f32 %v2727_v63, %v1071_v43  ;;  %v805_v16 = vpop.f32.mrf.mxu1 }
 0x1c1   : > { %v2249_v17 = vpop.eup %2248  ;;  %v683_v18 = vpack.c.bf16 %v638_v13, %v637_v12  ;;  %v806_v22 = vadd.f32 %v2644_v8, %v805_v16 }
 0x1c2   : > { %v1230_v19 = vmax.f32 %v1072_v15, 0.0  ;;  %v988_v20 = vpack.c.bf16 %v2249_v17, %v2247_v14 }
 0x1c3   : > { %844 = vmatmul.bf16.gmra.mxu1 %v683_v18  ;;  %2250 = vtanh.f32 %v806_v22 }
 0x1c4   : > { %v536_v21 = vpop.f32.mrf.mxu0  ;;  %1113 = vmatmul.bf16.gmra.mxu2 %v988_v20  ;;  %v1295_v48 = vmul.f32 %v2736_v6, %v1230_v19 }
 0x1c5   : > { %v537_v29 = vadd.f32 %v2546_v37, %v536_v21 }
 0x1c6   : > { %1360 = vadd.xlane.f32.xlu0 %v1295_v48 }
 0x1c7   : > { %v1074_v24 = vpop.f32.mrf.mxu2  ;;  %v639_v32 = vmax.f32 %v537_v29, 0.0 }
 0x1c8   : > { %v1075_v26 = vadd.f32 %v2727_v63, %v1074_v24  ;;  %v807_v27 = vpop.f32.mrf.mxu1 }
 0x1c9   : > { %v808_v52 = vadd.f32 %v2644_v8, %v807_v27  ;;  %v2251_v39 = vpop.eup %2250 }
 0x1ca   : > { %v1231_v28 = vmax.f32 %v1075_v26, 0.0 }
 0x1cb   : > { %2252 = vtanh.f32 %v808_v52 }
 0x1cc   : > { %v538_v30 = vpop.f32.mrf.mxu0  ;;  %v1296_v31 = vmul.f32 %v2736_v6, %v1231_v28 }
 0x1cd   : > { %v539_v57 = vadd.f32 %v2546_v37, %v538_v30 }
 0x1ce   : > { %1362 = vadd.xlane.f32.xlu1 %v1296_v31 }
 0x1cf   : > { %v640_v34 = vmax.f32 %v539_v57, 0.0  ;;  %v1076_v36 = vpop.f32.mrf.mxu2 }
 0x1d0   : > { %v1077_v40 = vadd.f32 %v2727_v63, %v1076_v36  ;;  %v810_v41 = vpop.f32.mrf.mxu1 }
 0x1d1   : > { %v2253_v42 = vpop.eup %2252  ;;  %v684_v44 = vpack.c.bf16 %v640_v34, %v639_v32  ;;  %v811_v51 = vadd.f32 %v2644_v8, %v810_v41 }
 0x1d2   : > { %v1232_v45 = vmax.f32 %v1077_v40, 0.0  ;;  %v989_v46 = vpack.c.bf16 %v2253_v42, %v2251_v39 }
 0x1d3   : > { %849 = vmatmul.bf16.gmra.mxu1 %v684_v44  ;;  %2254 = vtanh.f32 %v811_v51 }
 0x1d4   : > { %v541_v47 = vpop.f32.mrf.mxu0  ;;  %1118 = vmatmul.bf16.gmra.mxu2 %v989_v46  ;;  %v1297_v49 = vmul.f32 %v2736_v6, %v1232_v45 }
 0x1d5   : > { %v542_v62 = vadd.f32 %v2546_v37, %v541_v47 }
 0x1d6   : > { %1364 = vadd.xlane.f32.xlu1 %v1297_v49 }
 0x1d7   : > { %v1079_v55 = vpop.f32.mrf.mxu2  ;;  %v641_v3 = vmax.f32 %v542_v62, 0.0  ;;  %v2783_v62 = vpop.f32.mrf.mxu3 }
 0x1d8   : > { %v1080_v58 = vadd.f32 %v2727_v63, %v1079_v55  ;;  %v812_v59 = vpop.f32.mrf.mxu1 }
 0x1d9   : > { %v813_v60 = vadd.f32 %v2644_v8, %v812_v59  ;;  %v2255_v5 = vpop.eup %2254 }
 0x1da   : > { %v1233_v61 = vmax.f32 %v1080_v58, 0.0 }
 0x1db   : > { %2256 = vtanh.f32 %v813_v60 }
 0x1dc   : > { %v543_v0 = vpop.f32.mrf.mxu0  ;;  %v1298_v1 = vmul.f32 %v2736_v6, %v1233_v61 }
 0x1dd   : > { %v544_v2 = vadd.f32 %v2546_v37, %v543_v0 }
 0x1de   : > { %1366 = vadd.xlane.f32.xlu2 %v1298_v1 }
 0x1df   : > { %v642_v4 = vmax.f32 %v544_v2, 0.0  ;;  %v1081_v33 = vpop.f32.mrf.mxu2 }
 0x1e0   : > { %v1082_v35 = vadd.f32 %v2727_v63, %v1081_v33  ;;  %v815_v7 = vpop.f32.mrf.mxu1 }
 0x1e1   : > { %v2257_v9 = vpop.eup %2256  ;;  %v685_v10 = vpack.c.bf16 %v642_v4, %v641_v3  ;;  %v816_v43 = vadd.f32 %v2644_v8, %v815_v7 }
 0x1e2   : > { %v1234_v11 = vmax.f32 %v1082_v35, 0.0  ;;  %v990_v38 = vpack.c.bf16 %v2257_v9, %v2255_v5 }
 0x1e3   : > { %854 = vmatmul.bf16.gmra.mxu1 %v685_v10  ;;  %2258 = vtanh.f32 %v816_v43  ;;  %v568_v10 = vpop.f32.mrf.mxu3 }
 0x1e4   : > { %v546_v12 = vpop.f32.mrf.mxu0  ;;  %1123 = vmatmul.bf16.gmra.mxu2 %v990_v38  ;;  %v1299_v13 = vmul.f32 %v2736_v6, %v1234_v11 }
 0x1e5   : > { %v547_v19 = vadd.f32 %v2546_v37, %v546_v12 }
 0x1e6   : > { %1368 = vadd.xlane.f32.xlu2 %v1299_v13 }
 0x1e7   : > { %v1084_v14 = vpop.f32.mrf.mxu2  ;;  %v643_v22 = vmax.f32 %v547_v19, 0.0 }
 0x1e8   : > { %v1085_v15 = vadd.f32 %v2727_v63, %v1084_v14  ;;  %v817_v16 = vpop.f32.mrf.mxu1 }
 0x1e9   : > { %v818_v17 = vadd.f32 %v2644_v8, %v817_v16  ;;  %v2259_v24 = vpop.eup %2258 }
 0x1ea   : > { %v1235_v18 = vmax.f32 %v1085_v15, 0.0 }
 0x1eb   : > { %2260 = vtanh.f32 %v818_v17 }
 0x1ec   : > { %v548_v20 = vpop.f32.mrf.mxu0  ;;  %v1300_v21 = vmul.f32 %v2736_v6, %v1235_v18 }
 0x1ed   : > { %v549_v48 = vadd.f32 %v2546_v37, %v548_v20 }
 0x1ee   : > { %1370 = vadd.xlane.f32.xlu0 %v1300_v21 }
 0x1ef   : > { %v644_v23 = vmax.f32 %v549_v48, 0.0  ;;  %v1086_v50 = vpop.f32.mrf.mxu2 }
 0x1f0   : > { %v1087_v25 = vadd.f32 %v2727_v63, %v1086_v50  ;;  %v820_v26 = vpop.f32.mrf.mxu1 }
 0x1f1   : > { %v2261_v27 = vpop.eup %2260  ;;  %v686_v52 = vpack.c.bf16 %v644_v23, %v643_v22  ;;  %v821_v57 = vadd.f32 %v2644_v8, %v820_v26  ;;  %v2795_v23 = vpop.f32.mrf.mxu3 }
 0x1f2   : > { %v1236_v28 = vmax.f32 %v1087_v25, 0.0  ;;  %v991_v29 = vpack.c.bf16 %v2261_v27, %v2259_v24  ;;  %v2801_v25 = vld [vmem:[%s3320_s2] ss:$0 sm:$0xff] }
 0x1f3   : > { %859 = vmatmul.bf16.gmra.mxu1 %v686_v52  ;;  %2262 = vtanh.f32 %v821_v57 }
 0x1f4   : > { %v551_v30 = vpop.f32.mrf.mxu0  ;;  %1128 = vmatmul.bf16.gmra.mxu2 %v991_v29  ;;  %v1301_v31 = vmul.f32 %v2736_v6, %v1236_v28 }
 0x1f5   : > { %v552_v41 = vadd.f32 %v2546_v37, %v551_v30 }
 0x1f6   : > { %1372 = vadd.xlane.f32.xlu1 %v1301_v31 }
 0x1f7   : > { %v1089_v32 = vpop.f32.mrf.mxu2  ;;  %v645_v46 = vmax.f32 %v552_v41, 0.0 }
 0x1f8   : > { %v1090_v34 = vadd.f32 %v2727_v63, %v1089_v32  ;;  %v822_v36 = vpop.f32.mrf.mxu1 }
 0x1f9   : > { %v823_v39 = vadd.f32 %v2644_v8, %v822_v36  ;;  %v2263_v51 = vpop.eup %2262 }
 0x1fa   : > { %v1237_v40 = vmax.f32 %v1090_v34, 0.0 }
 0x1fb   : > { %2264 = vtanh.f32 %v823_v39 }
 0x1fc   : > { %v553_v42 = vpop.f32.mrf.mxu0  ;;  %v1302_v44 = vmul.f32 %v2736_v6, %v1237_v40 }
 0x1fd   : > { %v554_v45 = vadd.f32 %v2546_v37, %v553_v42  ;;  %v573_v42 = vpop.f32.mrf.mxu3 }
 0x1fe   : > { %1374 = vadd.xlane.f32.xlu2 %v1302_v44 }
 0x1ff   : > { %v646_v47 = vmax.f32 %v554_v45, 0.0  ;;  %v1091_v49 = vpop.f32.mrf.mxu2 }
 0x200   : > { %v1092_v53 = vadd.f32 %v2727_v63, %v1091_v49  ;;  %v825_v54 = vpop.f32.mrf.mxu1 }
 0x201   : > { %v2265_v55 = vpop.eup %2264  ;;  %v687_v56 = vpack.c.bf16 %v646_v47, %v645_v46  ;;  %v826_v0 = vadd.f32 %v2644_v8, %v825_v54 }
 0x202   : > { %v1238_v58 = vmax.f32 %v1092_v53, 0.0  ;;  %v992_v59 = vpack.c.bf16 %v2265_v55, %v2263_v51  ;;  %v567_v51 = vadd.f32 %v2801_v25, %v2783_v62  ;;  %v569_v53 = vadd.f32 %v2801_v25, %v568_v10 }
 0x203   : > { %864 = vmatmul.bf16.gmra.mxu1 %v687_v56  ;;  %2266 = vtanh.f32 %v826_v0 }
 0x204   : > { %v556_v60 = vpop.f32.mrf.mxu0  ;;  %1133 = vmatmul.bf16.gmra.mxu2 %v992_v59  ;;  %v1303_v61 = vmul.f32 %v2736_v6, %v1238_v58  ;;  %v651_v59 = vmax.f32 %v567_v51, 0.0 }
 0x205   : > { %v557_v5 = vadd.f32 %v2546_v37, %v556_v60  ;;  %v576_v58 = vpop.f32.mrf.mxu3  ;;  %v652_v60 = vmax.f32 %v569_v53, 0.0 }
 0x206   : > { %1376 = vadd.xlane.f32.xlu0 %v1303_v61  ;;  %v2819_v61 = vld [vmem:[%s3320_s2 + $0x4] ss:$0 sm:$0xff] }
 0x207   : > { %v1094_v1 = vpop.f32.mrf.mxu2  ;;  %v647_v11 = vmax.f32 %v557_v5, 0.0 }
 0x208   : > { %v1095_v2 = vadd.f32 %v2727_v63, %v1094_v1  ;;  %v827_v3 = vpop.f32.mrf.mxu1 }
 0x209   : > { %v828_v4 = vadd.f32 %v2644_v8, %v827_v3  ;;  %v2267_v13 = vpop.eup %2266 }
 0x20a   : > { %v1239_v33 = vmax.f32 %v1095_v2, 0.0 }
 0x20b   : > { %2268 = vtanh.f32 %v828_v4 }
 0x20c   : > { %v558_v35 = vpop.f32.mrf.mxu0  ;;  %v1304_v7 = vmul.f32 %v2736_v6, %v1239_v33  ;;  %v690_v33 = vpack.c.bf16 %v652_v60, %v651_v59 }
 0x20d   : > { %v559_v9 = vadd.f32 %v2546_v37, %v558_v35 }
 0x20e   : > { %1378 = vadd.xlane.f32.xlu1 %v1304_v7 }
 0x20f   : > { %v648_v38 = vmax.f32 %v559_v9, 0.0  ;;  %v1096_v12 = vpop.f32.mrf.mxu2 }
 0x210   : > { %v1097_v43 = vadd.f32 %v2727_v63, %v1096_v12  ;;  %v830_v14 = vpop.f32.mrf.mxu1 }
 0x211   : > { %v2269_v15 = vpop.eup %2268  ;;  %v688_v16 = vpack.c.bf16 %v648_v38, %v647_v11  ;;  %v831_v37 = vadd.f32 %v2644_v8, %v830_v14  ;;  %v578_v11 = vpop.f32.mrf.mxu3  ;;  %v574_v14 = vadd.f32 %v2801_v25, %v573_v42 }
 0x212   : > { %v1240_v17 = vmax.f32 %v1097_v43, 0.0  ;;  %v993_v18 = vpack.c.bf16 %v2269_v15, %v2267_v13  ;;  %v572_v43 = vadd.f32 %v2801_v25, %v2795_v23 }
 0x213   : > { %869 = vmatmul.bf16.gmra.mxu1 %v688_v16  ;;  %2270 = vtanh.f32 %v831_v37  ;;  %v654_v37 = vmax.f32 %v574_v14, 0.0 }
 0x214   : > { %v561_v19 = vpop.f32.mrf.mxu0  ;;  %1138 = vmatmul.bf16.gmra.mxu2 %v993_v18  ;;  %v1305_v20 = vmul.f32 %v2736_v6, %v1240_v17 }
 0x215   : > { %v562_v26 = vadd.f32 %v2801_v25, %v561_v19 }
 0x216   : > { %1380 = vadd.xlane.f32.xlu2 %v1305_v20  ;;  %v653_v20 = vmax.f32 %v572_v43, 0.0 }
 0x217   : > { %v1099_v21 = vpop.f32.mrf.mxu2  ;;  %v649_v29 = vmax.f32 %v562_v26, 0.0 }
 0x218   : > { %v1100_v48 = vadd.f32 %v2727_v63, %v1099_v21  ;;  %v832_v22 = vpop.f32.mrf.mxu1 }
 0x219   : > { %v833_v50 = vadd.f32 %v2644_v8, %v832_v22  ;;  %v2271_v57 = vpop.eup %2270 }
 0x21a   : > { %v1241_v24 = vmax.f32 %v1100_v48, 0.0 }
 0x21b   : > { %2272 = vtanh.f32 %v833_v50  ;;  %v581_v50 = vpop.f32.mrf.mxu3 }
 0x21c   : > { %v563_v27 = vpop.f32.mrf.mxu0  ;;  %v1306_v52 = vmul.f32 %v2736_v6, %v1241_v24 }
 0x21d   : > { %v564_v28 = vadd.f32 %v2801_v25, %v563_v27  ;;  %v691_v27 = vpack.c.bf16 %v654_v37, %v653_v20 }
 0x21e   : > { %1382 = vadd.xlane.f32.xlu0 %v1306_v52 }
 0x21f   : > { %v650_v30 = vmax.f32 %v564_v28, 0.0  ;;  %v1101_v31 = vpop.f32.mrf.mxu2 }
 0x220   : > { %v1102_v32 = vadd.f32 %v2727_v63, %v1101_v31  ;;  %v835_v34 = vpop.f32.mrf.mxu1 }
 0x221   : > { %v2273_v36 = vpop.eup %2272  ;;  %v689_v39 = vpack.c.bf16 %v650_v30, %v649_v29  ;;  %v836_v45 = vadd.f32 %v2644_v8, %v835_v34 }
 0x222   : > { %v1242_v40 = vmax.f32 %v1102_v32, 0.0  ;;  %v994_v41 = vpack.c.bf16 %v2273_v36, %v2271_v57  ;;  %v577_v36 = vadd.f32 %v2801_v25, %v576_v58 }
 0x223   : > { %874 = vmatmul.bf16.vlgmr.msrb.gmra.mxu3 %v689_v39  ;;  %2274 = vtanh.f32 %v836_v45  ;;  %v579_v39 = vadd.f32 %v2801_v25, %v578_v11  ;;  %v583_v45 = vpop.f32.mrf.mxu3 }
 0x224   : > { %1143 = vmatmul.bf16.gmra.mxu2 %v994_v41  ;;  %v1307_v44 = vmul.f32 %v2736_v6, %v1242_v40 }
 0x226   : > { %1384 = vadd.xlane.f32.xlu1 %v1307_v44 }
 0x227   : > { %v1104_v46 = vpop.f32.mrf.mxu2 }
 0x228   : > { %v1105_v47 = vadd.f32 %v2727_v63, %v1104_v46  ;;  %v837_v49 = vpop.f32.mrf.mxu1 }
 0x229   : > { %v838_v54 = vadd.f32 %v2644_v8, %v837_v49  ;;  %v2275_v0 = vpop.eup %2274  ;;  %v656_v49 = vmax.f32 %v579_v39, 0.0 }
 0x22a   : > { %v1243_v55 = vmax.f32 %v1105_v47, 0.0  ;;  %v655_v47 = vmax.f32 %v577_v36, 0.0 }
 0x22b   : > { %2276 = vtanh.f32 %v838_v54 }
 0x22c   : > { %v1308_v56 = vmul.f32 %v2736_v6, %v1243_v55  ;;  %v692_v58 = vpack.c.bf16 %v656_v49, %v655_v47 }
 0x22e   : > { %1386 = vadd.xlane.f32.xlu2 %v1308_v56 }
 0x22f   : > { %v1106_v62 = vpop.f32.mrf.mxu2 }
 0x230   : > { %v1107_v1 = vadd.f32 %v2727_v63, %v1106_v62  ;;  %v840_v2 = vpop.f32.mrf.mxu1 }
 0x231   : > { %v2277_v3 = vpop.eup %2276  ;;  %v1359_v4 = vpop.xlane.xlu0 %1358  ;;  %v841_v10 = vadd.f32 %v2644_v8, %v840_v2  ;;  %v2860_v2 = vld [vmem:[%s3320_s2 + $0x1] ss:$0 sm:$0xff] }
 0x232   : > { %v1244_v5 = vmax.f32 %v1107_v1, 0.0  ;;  %v1487_v35 = vadd.f32 %v2819_v61, %v1359_v4  ;;  %v995_v7 = vpack.c.bf16 %v2277_v3, %v2275_v0  ;;  %v586_v1 = vpop.f32.mrf.mxu3 }
 0x233   : > { %879 = vmatmul.bf16.gmra.mxu3 %v690_v33  ;;  %2278 = vtanh.f32 %v841_v10 }
 0x234   : > { %1552 = vst.msk [vmem:[%s2823_s12] sm:$0xff] %vm1551_vm1, %v1487_v35  ;;  %1148 = vmatmul.bf16.gmra.mxu2 %v995_v7  ;;  %v1309_v9 = vmul.f32 %v2736_v6, %v1244_v5  ;;  %v582_v35 = vadd.f32 %v2801_v25, %v581_v50  ;;  %v584_v7 = vadd.f32 %v2801_v25, %v583_v45 }
 0x236   : > { %1388 = vadd.xlane.f32.xlu0 %v1309_v9  ;;  %v658_v43 = vmax.f32 %v584_v7, 0.0 }
 0x237   : > { %v1109_v38 = vpop.f32.mrf.mxu2 }
 0x238   : > { %v1110_v12 = vadd.f32 %v2727_v63, %v1109_v38  ;;  %v842_v13 = vpop.f32.mrf.mxu1 }
 0x239   : > { %v843_v15 = vadd.f32 %v2644_v8, %v842_v13  ;;  %v1361_v16 = vpop.xlane.xlu0 %1360  ;;  %v2279_v48 = vpop.eup %2278  ;;  %v657_v13 = vmax.f32 %v582_v35, 0.0 }
 0x23a   : > { %v1245_v17 = vmax.f32 %v1110_v12, 0.0  ;;  %v1488_v18 = vadd.f32 %v2819_v61, %v1361_v16  ;;  %v588_v14 = vpop.f32.mrf.mxu3 }
 0x23b   : > { %2280 = vtanh.f32 %v843_v15  ;;  %v693_v37 = vpack.c.bf16 %v658_v43, %v657_v13 }
 0x23c   : > { %1553 = vst.msk [vmem:[%s2823_s12 + $0x8] sm:$0xff] %vm1551_vm1, %v1488_v18  ;;  %v1310_v19 = vmul.f32 %v2736_v6, %v1245_v17 }
 0x23e   : > { %1390 = vadd.xlane.f32.xlu1 %v1310_v19 }
 0x23f   : > { %v1111_v21 = vpop.f32.mrf.mxu2 }
 0x240   : > { %v1112_v22 = vadd.f32 %v2727_v63, %v1111_v21  ;;  %v845_v23 = vpop.f32.mrf.mxu1 }
 0x241   : > { %v2281_v24 = vpop.eup %2280  ;;  %v1363_v26 = vpop.xlane.xlu1 %1362  ;;  %v846_v31 = vadd.f32 %v2644_v8, %v845_v23 }
 0x242   : > { %v1246_v52 = vmax.f32 %v1112_v22, 0.0  ;;  %v1489_v28 = vadd.f32 %v2819_v61, %v1363_v26  ;;  %v996_v29 = vpack.c.bf16 %v2281_v24, %v2279_v48 }
 0x243   : > { %884 = vmatmul.bf16.gmra.mxu3 %v691_v27  ;;  %2282 = vtanh.f32 %v846_v31 }
 0x244   : > { %1554 = vst.msk [vmem:[%s2823_s12 + $0x10] sm:$0xff] %vm1551_vm1, %v1489_v28  ;;  %1153 = vmatmul.bf16.gmra.mxu2 %v996_v29  ;;  %v1311_v30 = vmul.f32 %v2736_v6, %v1246_v52  ;;  %v591_v52 = vpop.f32.mrf.mxu3  ;;  %v587_v28 = vadd.f32 %v2801_v25, %v586_v1  ;;  %v589_v29 = vadd.f32 %v2801_v25, %v588_v14 }
 0x246   : > { %1392 = vadd.xlane.f32.xlu2 %v1311_v30  ;;  %v659_v36 = vmax.f32 %v587_v28, 0.0  ;;  %v660_v39 = vmax.f32 %v589_v29, 0.0 }
 0x247   : > { %v1114_v57 = vpop.f32.mrf.mxu2 }
 0x248   : > { %v1115_v32 = vadd.f32 %v2727_v63, %v1114_v57  ;;  %v847_v34 = vpop.f32.mrf.mxu1  ;;  %v694_v47 = vpack.c.bf16 %v660_v39, %v659_v36 }
 0x249   : > { %v848_v40 = vadd.f32 %v2644_v8, %v847_v34  ;;  %v1365_v41 = vpop.xlane.xlu1 %1364  ;;  %v2283_v53 = vpop.eup %2282 }
 0x24a   : > { %v1247_v42 = vmax.f32 %v1115_v32, 0.0  ;;  %v1490_v44 = vadd.f32 %v2819_v61, %v1365_v41 }
 0x24b   : > { %2284 = vtanh.f32 %v848_v40 }
 0x24c   : > { %1555 = vst.msk [vmem:[%s2823_s12 + $0x18] sm:$0xff] %vm1551_vm1, %v1490_v44  ;;  %v1312_v46 = vmul.f32 %v2736_v6, %v1247_v42 }
 0x24e   : > { %1394 = vadd.xlane.f32.xlu0 %v1312_v46 }
 0x24f   : > { %v1116_v51 = vpop.f32.mrf.mxu2 }
 0x250   : > { %v1117_v54 = vadd.f32 %v2727_v63, %v1116_v51  ;;  %v850_v8 = vpop.f32.mrf.mxu1 }
 0x251   : > { %v2285_v55 = vpop.eup %2284  ;;  %v1367_v56 = vpop.xlane.xlu2 %1366  ;;  %v851_v3 = vadd.f32 %v2860_v2, %v850_v8 }
 0x252   : > { %v1248_v59 = vmax.f32 %v1117_v54, 0.0  ;;  %v1491_v60 = vadd.f32 %v2819_v61, %v1367_v56  ;;  %v997_v62 = vpack.c.bf16 %v2285_v55, %v2283_v53  ;;  %v593_v53 = vpop.f32.mrf.mxu3 }
 0x253   : > { %889 = vmatmul.bf16.gmra.mxu3 %v692_v58  ;;  %2286 = vtanh.f32 %v851_v3 }
 0x254   : > { %1556 = vst.msk [vmem:[%s2823_s12 + $0x20] sm:$0xff] %vm1551_vm1, %v1491_v60  ;;  %1158 = vmatmul.bf16.gmra.mxu2 %v997_v62  ;;  %v1313_v0 = vmul.f32 %v2736_v6, %v1248_v59  ;;  %v592_v60 = vadd.f32 %v2801_v25, %v591_v52  ;;  %v594_v62 = vadd.f32 %v2801_v25, %v593_v53 }
 0x256   : > { %1396 = vadd.xlane.f32.xlu1 %v1313_v0  ;;  %v661_v35 = vmax.f32 %v592_v60, 0.0  ;;  %v662_v7 = vmax.f32 %v594_v62, 0.0 }
 0x257   : > { %v1119_v4 = vpop.f32.mrf.mxu2 }
 0x258   : > { %v1120_v33 = vadd.f32 %v2727_v63, %v1119_v4  ;;  %v852_v5 = vpop.f32.mrf.mxu1  ;;  %v695_v43 = vpack.c.bf16 %v662_v7, %v661_v35 }
 0x259   : > { %v853_v9 = vadd.f32 %v2860_v2, %v852_v5  ;;  %v1369_v10 = vpop.xlane.xlu2 %1368  ;;  %v2287_v16 = vpop.eup %2286 }
 0x25a   : > { %v1249_v11 = vmax.f32 %v1120_v33, 0.0  ;;  %v1492_v38 = vadd.f32 %v2819_v61, %v1369_v10  ;;  %v596_v33 = vpop.f32.mrf.mxu3 }
 0x25b   : > { %2288 = vtanh.f32 %v853_v9 }
 0x25c   : > { %1557 = vst.msk [vmem:[%s2823_s12 + $0x28] sm:$0xff] %vm1551_vm1, %v1492_v38  ;;  %v1314_v12 = vmul.f32 %v2736_v6, %v1249_v11 }
 0x25e   : > { %1398 = vadd.xlane.f32.xlu2 %v1314_v12 }
 0x25f   : > { %v1121_v15 = vpop.f32.mrf.mxu2 }
 0x260   : > { %v1122_v17 = vadd.f32 %v2727_v63, %v1121_v15  ;;  %v855_v18 = vpop.f32.mrf.mxu1 }
 0x261   : > { %v2289_v19 = vpop.eup %2288  ;;  %v1371_v20 = vpop.xlane.xlu0 %1370  ;;  %v856_v50 = vadd.f32 %v2860_v2, %v855_v18 }
 0x262   : > { %v1250_v21 = vmax.f32 %v1122_v17, 0.0  ;;  %v1493_v48 = vadd.f32 %v2819_v61, %v1371_v20  ;;  %v998_v22 = vpack.c.bf16 %v2289_v19, %v2287_v16  ;;  %v598_v19 = vpop.f32.mrf.mxu3 }
 0x263   : > { %894 = vmatmul.bf16.gmra.mxu3 %v693_v37  ;;  %2290 = vtanh.f32 %v856_v50 }
 0x264   : > { %1558 = vst.msk [vmem:[%s2823_s12 + $0x30] sm:$0xff] %vm1551_vm1, %v1493_v48  ;;  %1163 = vmatmul.bf16.gmra.mxu2 %v998_v22  ;;  %v1315_v23 = vmul.f32 %v2736_v6, %v1250_v21  ;;  %v597_v48 = vadd.f32 %v2801_v25, %v596_v33  ;;  %v599_v22 = vadd.f32 %v2801_v25, %v598_v19 }
 0x266   : > { %1400 = vadd.xlane.f32.xlu0 %v1315_v23  ;;  %v663_v52 = vmax.f32 %v597_v48, 0.0  ;;  %v664_v28 = vmax.f32 %v599_v22, 0.0 }
 0x267   : > { %v1124_v24 = vpop.f32.mrf.mxu2 }
 0x268   : > { %v1125_v26 = vadd.f32 %v2727_v63, %v1124_v24  ;;  %v857_v27 = vpop.f32.mrf.mxu1 }
 0x269   : > { %v858_v30 = vadd.f32 %v2860_v2, %v857_v27  ;;  %v1373_v31 = vpop.xlane.xlu1 %1372  ;;  %v2291_v41 = vpop.eup %2290 }
 0x26a   : > { %v1251_v57 = vmax.f32 %v1125_v26, 0.0  ;;  %v1494_v32 = vadd.f32 %v2819_v61, %v1373_v31 }
 0x26b   : > { %2292 = vtanh.f32 %v858_v30 }
 0x26c   : > { %1559 = vst.msk [vmem:[%s2823_s12 + $0x38] sm:$0xff] %vm1551_vm1, %v1494_v32  ;;  %v1316_v34 = vmul.f32 %v2736_v6, %v1251_v57 }
 0x26e   : > { %1402 = vadd.xlane.f32.xlu1 %v1316_v34  ;;  %v696_v34 = vpack.c.bf16 %v664_v28, %v663_v52 }
 0x26f   : > { %v1126_v40 = vpop.f32.mrf.mxu2 }
 0x270   : > { %v1127_v42 = vadd.f32 %v2727_v63, %v1126_v40  ;;  %v860_v44 = vpop.f32.mrf.mxu1 }
 0x271   : > { %v2293_v45 = vpop.eup %2292  ;;  %v1375_v46 = vpop.xlane.xlu2 %1374  ;;  %v861_v55 = vadd.f32 %v2860_v2, %v860_v44 }
 0x272   : > { %v1252_v49 = vmax.f32 %v1127_v42, 0.0  ;;  %v1495_v51 = vadd.f32 %v2819_v61, %v1375_v46  ;;  %v999_v54 = vpack.c.bf16 %v2293_v45, %v2291_v41 }
 0x273   : > { %899 = vmatmul.bf16.gmra.mxu3 %v694_v47  ;;  %2294 = vtanh.f32 %v861_v55 }
 0x274   : > { %1560 = vst.msk [vmem:[%s2823_s12 + $0x40] sm:$0xff] %vm1551_vm1, %v1495_v51  ;;  %1168 = vmatmul.bf16.gmra.mxu2 %v999_v54  ;;  %v1317_v8 = vmul.f32 %v2736_v6, %v1252_v49 }
 0x276   : > { %1404 = vadd.xlane.f32.xlu2 %v1317_v8 }
 0x277   : > { %v1129_v56 = vpop.f32.mrf.mxu2 }
 0x278   : > { %v1130_v58 = vadd.f32 %v2727_v63, %v1129_v56  ;;  %v862_v59 = vpop.f32.mrf.mxu1 }
 0x279   : > { %v863_v0 = vadd.f32 %v2860_v2, %v862_v59  ;;  %v1377_v1 = vpop.xlane.xlu0 %1376  ;;  %v2295_v10 = vpop.eup %2294 }
 0x27a   : > { %v1253_v3 = vmax.f32 %v1130_v58, 0.0  ;;  %v1496_v4 = vadd.f32 %v2819_v61, %v1377_v1 }
 0x27b   : > { %2296 = vtanh.f32 %v863_v0 }
 0x27c   : > { %1561 = vst.msk [vmem:[%s2823_s12 + $0x48] sm:$0xff] %vm1551_vm1, %v1496_v4  ;;  %v1318_v5 = vmul.f32 %v2736_v6, %v1253_v3 }
 0x27e   : > { %1406 = vadd.xlane.f32.xlu0 %v1318_v5 }
 0x27f   : > { %v1131_v9 = vpop.f32.mrf.mxu2 }
 0x280   : > { %v1132_v11 = vadd.f32 %v2727_v63, %v1131_v9  ;;  %v865_v38 = vpop.f32.mrf.mxu1 }
 0x281   : > { %v2297_v12 = vpop.eup %2296  ;;  %v1379_v13 = vpop.xlane.xlu1 %1378  ;;  %v866_v18 = vadd.f32 %v2860_v2, %v865_v38 }
 0x282   : > { %v1254_v14 = vmax.f32 %v1132_v11, 0.0  ;;  %v1497_v15 = vadd.f32 %v2819_v61, %v1379_v13  ;;  %v1000_v16 = vpack.c.bf16 %v2297_v12, %v2295_v10 }
 0x283   : > { %904 = vmatmul.bf16.gmra.mxu3 %v695_v43  ;;  %2298 = vtanh.f32 %v866_v18 }
 0x284   : > { %1562 = vst.msk [vmem:[%s2823_s12 + $0x50] sm:$0xff] %vm1551_vm1, %v1497_v15  ;;  %1173 = vmatmul.bf16.gmra.mxu2 %v1000_v16  ;;  %v1319_v17 = vmul.f32 %v2736_v6, %v1254_v14 }
 0x286   : > { %1408 = vadd.xlane.f32.xlu1 %v1319_v17 }
 0x287   : > { %v1134_v20 = vpop.f32.mrf.mxu2 }
 0x288   : > { %v1135_v37 = vadd.f32 %v2727_v63, %v1134_v20  ;;  %v867_v21 = vpop.f32.mrf.mxu1 }
 0x289   : > { %v868_v23 = vadd.f32 %v2860_v2, %v867_v21  ;;  %v1381_v50 = vpop.xlane.xlu2 %1380  ;;  %v2299_v30 = vpop.eup %2298 }
 0x28a   : > { %v1255_v24 = vmax.f32 %v1135_v37, 0.0  ;;  %v1498_v26 = vadd.f32 %v2819_v61, %v1381_v50 }
 0x28b   : > { %2300 = vtanh.f32 %v868_v23 }
 0x28c   : > { %1563 = vst.msk [vmem:[%s2823_s12 + $0x58] sm:$0xff] %vm1551_vm1, %v1498_v26  ;;  %v1320_v27 = vmul.f32 %v2736_v6, %v1255_v24 }
 0x28e   : > { %1410 = vadd.xlane.f32.xlu2 %v1320_v27 }
 0x28f   : > { %v1136_v29 = vpop.f32.mrf.mxu2 }
 0x290   : > { %v1137_v25 = vadd.f32 %v2727_v63, %v1136_v29  ;;  %v870_v31 = vpop.f32.mrf.mxu1 }
 0x291   : > { %v2301_v57 = vpop.eup %2300  ;;  %v1383_v32 = vpop.xlane.xlu0 %1382  ;;  %v871_v42 = vadd.f32 %v2860_v2, %v870_v31 }
 0x292   : > { %v1256_v36 = vmax.f32 %v1137_v25, 0.0  ;;  %v1499_v39 = vadd.f32 %v2819_v61, %v1383_v32  ;;  %v1001_v40 = vpack.c.bf16 %v2301_v57, %v2299_v30 }
 0x293   : > { %909 = vmatmul.bf16.gmra.mxu3 %v696_v34  ;;  %2302 = vtanh.f32 %v871_v42 }
 0x294   : > { %1564 = vst.msk [vmem:[%s2823_s12 + $0x60] sm:$0xff] %vm1551_vm1, %v1499_v39  ;;  %1178 = vmatmul.bf16.gmra.mxu2 %v1001_v40  ;;  %v1321_v41 = vmul.f32 %v2736_v6, %v1256_v36 }
 0x296   : > { %1412 = vadd.xlane.f32.xlu0 %v1321_v41 }
 0x297   : > { %v1139_v44 = vpop.f32.mrf.mxu2 }
 0x298   : > { %v1140_v45 = vadd.f32 %v2727_v63, %v1139_v44  ;;  %v872_v46 = vpop.f32.mrf.mxu1 }
 0x299   : > { %v873_v47 = vadd.f32 %v2860_v2, %v872_v46  ;;  %v1385_v49 = vpop.xlane.xlu1 %1384  ;;  %v2303_v55 = vpop.eup %2302 }
 0x29a   : > { %v1257_v51 = vmax.f32 %v1140_v45, 0.0  ;;  %v1500_v53 = vadd.f32 %v2819_v61, %v1385_v49 }
 0x29b   : > { %2304 = vtanh.f32 %v873_v47 }
 0x29c   : > { %1565 = vst.msk [vmem:[%s2823_s12 + $0x68] sm:$0xff] %vm1551_vm1, %v1500_v53  ;;  %v1322_v54 = vmul.f32 %v2736_v6, %v1257_v51 }
 0x29e   : > { %1414 = vadd.xlane.f32.xlu1 %v1322_v54 }
 0x29f   : > { %v1141_v8 = vpop.f32.mrf.mxu2 }
 0x2a0   : > { %v1142_v56 = vadd.f32 %v2727_v63, %v1141_v8 }
 0x2a1   : > { %v2305_v58 = vpop.eup %2304  ;;  %v1387_v59 = vpop.xlane.xlu2 %1386 }
 0x2a2   : > { %v1258_v60 = vmax.f32 %v1142_v56, 0.0  ;;  %v1501_v62 = vadd.f32 %v2819_v61, %v1387_v59  ;;  %v1002_v0 = vpack.c.bf16 %v2305_v58, %v2303_v55 }
 0x2a4   : > { %1566 = vst.msk [vmem:[%s2823_s12 + $0x70] sm:$0xff] %vm1551_vm1, %v1501_v62  ;;  %1183 = vmatmul.bf16.gmra.mxu2 %v1002_v0  ;;  %v1323_v1 = vmul.f32 %v2736_v6, %v1258_v60 }
 0x2a6   : > { %v875_v3 = vpop.f32.mrf.mxu3  ;;  %1416 = vadd.xlane.f32.xlu2 %v1323_v1 }
 0x2a7   : > { %v1144_v4 = vpop.f32.mrf.mxu2  ;;  %v876_v9 = vadd.f32 %v2860_v2, %v875_v3 }
 0x2a8   : > { %v1145_v33 = vadd.f32 %v2727_v63, %v1144_v4 }
 0x2a9   : > { %v1389_v5 = vpop.xlane.xlu0 %1388  ;;  %2306 = vtanh.f32 %v876_v9 }
 0x2aa   : > { %v1259_v35 = vmax.f32 %v1145_v33, 0.0  ;;  %v1502_v7 = vadd.f32 %v2819_v61, %v1389_v5 }
 0x2ac   : > { %1567 = vst.msk [vmem:[%s2823_s12 + $0x78] sm:$0xff] %vm1551_vm1, %v1502_v7  ;;  %v1324_v10 = vmul.f32 %v2736_v6, %v1259_v35 }
 0x2ae   : > { %v877_v11 = vpop.f32.mrf.mxu3  ;;  %1418 = vadd.xlane.f32.xlu0 %v1324_v10 }
 0x2af   : > { %v878_v38 = vadd.f32 %v2860_v2, %v877_v11  ;;  %v1146_v12 = vpop.f32.mrf.mxu2  ;;  %v2307_v17 = vpop.eup %2306 }
 0x2b0   : > { %v1147_v13 = vadd.f32 %v2727_v63, %v1146_v12 }
 0x2b1   : > { %2308 = vtanh.f32 %v878_v38  ;;  %v1391_v43 = vpop.xlane.xlu1 %1390 }
 0x2b2   : > { %v1260_v14 = vmax.f32 %v1147_v13, 0.0  ;;  %v1503_v15 = vadd.f32 %v2819_v61, %v1391_v43 }
 0x2b4   : > { %1568 = vst.msk [vmem:[%s2823_s12 + $0x80] sm:$0xff] %vm1551_vm1, %v1503_v15  ;;  %v1325_v16 = vmul.f32 %v2736_v6, %v1260_v14 }
 0x2b6   : > { %v880_v18 = vpop.f32.mrf.mxu3  ;;  %1420 = vadd.xlane.f32.xlu1 %v1325_v16 }
 0x2b7   : > { %v2309_v19 = vpop.eup %2308  ;;  %v1149_v20 = vpop.f32.mrf.mxu2  ;;  %v881_v50 = vadd.f32 %v2860_v2, %v880_v18 }
 0x2b8   : > { %v1003_v37 = vpack.c.bf16 %v2309_v19, %v2307_v17  ;;  %v1150_v21 = vadd.f32 %v2727_v63, %v1149_v20  ;;  %v2952_v63 = vld [vmem:[%s3320_s2 + $0x2] ss:$0 sm:$0xff] }
 0x2b9   : > { %v1393_v48 = vpop.xlane.xlu2 %1392  ;;  %2310 = vtanh.f32 %v881_v50 }
 0x2ba   : > { %v1261_v22 = vmax.f32 %v1150_v21, 0.0  ;;  %v1504_v23 = vadd.f32 %v2819_v61, %v1393_v48  ;;  %1188 = vmatmul.bf16.vlgmr.msra.gmra.mxu3 %v1003_v37 }
 0x2bc   : > { %1569 = vst.msk [vmem:[%s2823_s12 + $0x88] sm:$0xff] %vm1551_vm1, %v1504_v23  ;;  %v1326_v24 = vmul.f32 %v2736_v6, %v1261_v22  ;;  %v2961_v6 = vld [vmem:[%s3320_s2 + $0x3] ss:$0 sm:$0xff] }
 0x2be   : > { %v882_v26 = vpop.f32.mrf.mxu3  ;;  %1422 = vadd.xlane.f32.xlu2 %v1326_v24 }
 0x2bf   : > { %v883_v27 = vadd.f32 %v2860_v2, %v882_v26  ;;  %v1151_v52 = vpop.f32.mrf.mxu2  ;;  %v2311_v57 = vpop.eup %2310 }
 0x2c0   : > { %v1152_v28 = vadd.f32 %v2952_v63, %v1151_v52 }
 0x2c1   : > { %2312 = vtanh.f32 %v883_v27  ;;  %v1395_v29 = vpop.xlane.xlu0 %1394 }
 0x2c2   : > { %v1262_v30 = vmax.f32 %v1152_v28, 0.0  ;;  %v1505_v25 = vadd.f32 %v2819_v61, %v1395_v29 }
 0x2c4   : > { %1570 = vst.msk [vmem:[%s2823_s12 + $0x90] sm:$0xff] %vm1551_vm1, %v1505_v25  ;;  %v1327_v31 = vmul.f32 %v2961_v6, %v1262_v30 }
 0x2c6   : > { %v885_v32 = vpop.f32.mrf.mxu3  ;;  %1424 = vadd.xlane.f32.xlu0 %v1327_v31 }
 0x2c7   : > { %v2313_v34 = vpop.eup %2312  ;;  %v1154_v36 = vpop.f32.mrf.mxu2  ;;  %v886_v45 = vadd.f32 %v2860_v2, %v885_v32 }
 0x2c8   : > { %v1155_v39 = vadd.f32 %v2952_v63, %v1154_v36  ;;  %v1004_v40 = vpack.c.bf16 %v2313_v34, %v2311_v57 }
 0x2c9   : > { %v1397_v41 = vpop.xlane.xlu1 %1396  ;;  %2314 = vtanh.f32 %v886_v45 }
 0x2ca   : > { %v1263_v42 = vmax.f32 %v1155_v39, 0.0  ;;  %v1506_v44 = vadd.f32 %v2819_v61, %v1397_v41  ;;  %1193 = vmatmul.bf16.gmra.mxu3 %v1004_v40 }
 0x2cc   : > { %1571 = vst.msk [vmem:[%s2823_s12 + $0x98] sm:$0xff] %vm1551_vm1, %v1506_v44  ;;  %v1328_v46 = vmul.f32 %v2961_v6, %v1263_v42 }
 0x2ce   : > { %v887_v47 = vpop.f32.mrf.mxu3  ;;  %1426 = vadd.xlane.f32.xlu1 %v1328_v46 }
 0x2cf   : > { %v888_v49 = vadd.f32 %v2860_v2, %v887_v47  ;;  %v1156_v51 = vpop.f32.mrf.mxu2  ;;  %v2315_v58 = vpop.eup %2314 }
 0x2d0   : > { %v1157_v53 = vadd.f32 %v2952_v63, %v1156_v51 }
 0x2d1   : > { %2316 = vtanh.f32 %v888_v49  ;;  %v1399_v54 = vpop.xlane.xlu2 %1398 }
 0x2d2   : > { %v1264_v8 = vmax.f32 %v1157_v53, 0.0  ;;  %v1507_v55 = vadd.f32 %v2819_v61, %v1399_v54 }
 0x2d4   : > { %1572 = vst.msk [vmem:[%s2823_s12 + $0xa0] sm:$0xff] %vm1551_vm1, %v1507_v55  ;;  %v1329_v56 = vmul.f32 %v2961_v6, %v1264_v8 }
 0x2d6   : > { %v890_v59 = vpop.f32.mrf.mxu3  ;;  %1428 = vadd.xlane.f32.xlu2 %v1329_v56 }
 0x2d7   : > { %v2317_v60 = vpop.eup %2316  ;;  %v1159_v62 = vpop.f32.mrf.mxu2  ;;  %v891_v5 = vadd.f32 %v2860_v2, %v890_v59 }
 0x2d8   : > { %v1160_v0 = vadd.f32 %v2952_v63, %v1159_v62  ;;  %v1005_v1 = vpack.c.bf16 %v2317_v60, %v2315_v58 }
 0x2d9   : > { %v1401_v3 = vpop.xlane.xlu0 %1400  ;;  %2318 = vtanh.f32 %v891_v5 }
 0x2da   : > { %v1265_v4 = vmax.f32 %v1160_v0, 0.0  ;;  %v1508_v33 = vadd.f32 %v2819_v61, %v1401_v3  ;;  %1198 = vmatmul.bf16.gmra.mxu3 %v1005_v1 }
 0x2dc   : > { %1573 = vst.msk [vmem:[%s2823_s12 + $0xa8] sm:$0xff] %vm1551_vm1, %v1508_v33  ;;  %v1330_v35 = vmul.f32 %v2961_v6, %v1265_v4 }
 0x2de   : > { %v892_v7 = vpop.f32.mrf.mxu3  ;;  %1430 = vadd.xlane.f32.xlu0 %v1330_v35 }
 0x2df   : > { %v893_v9 = vadd.f32 %v2860_v2, %v892_v7  ;;  %v1161_v10 = vpop.f32.mrf.mxu2  ;;  %v2319_v14 = vpop.eup %2318 }
 0x2e0   : > { %v1162_v11 = vadd.f32 %v2952_v63, %v1161_v10 }
 0x2e1   : > { %2320 = vtanh.f32 %v893_v9  ;;  %v1403_v38 = vpop.xlane.xlu1 %1402 }
 0x2e2   : > { %v1266_v12 = vmax.f32 %v1162_v11, 0.0  ;;  %v1509_v13 = vadd.f32 %v2819_v61, %v1403_v38 }
 0x2e4   : > { %1574 = vst.msk [vmem:[%s2823_s12 + $0xb0] sm:$0xff] %vm1551_vm1, %v1509_v13  ;;  %v1331_v43 = vmul.f32 %v2961_v6, %v1266_v12 }
 0x2e6   : > { %v895_v15 = vpop.f32.mrf.mxu3  ;;  %1432 = vadd.xlane.f32.xlu1 %v1331_v43 }
 0x2e7   : > { %v2321_v16 = vpop.eup %2320  ;;  %v1164_v17 = vpop.f32.mrf.mxu2  ;;  %v896_v48 = vadd.f32 %v2860_v2, %v895_v15 }
 0x2e8   : > { %v1165_v18 = vadd.f32 %v2952_v63, %v1164_v17  ;;  %v1006_v19 = vpack.c.bf16 %v2321_v16, %v2319_v14 }
 0x2e9   : > { %v1405_v20 = vpop.xlane.xlu2 %1404  ;;  %2322 = vtanh.f32 %v896_v48 }
 0x2ea   : > { %v1267_v37 = vmax.f32 %v1165_v18, 0.0  ;;  %v1510_v21 = vadd.f32 %v2819_v61, %v1405_v20  ;;  %1203 = vmatmul.bf16.gmra.mxu3 %v1006_v19 }
 0x2ec   : > { %1575 = vst.msk [vmem:[%s2823_s12 + $0xb8] sm:$0xff] %vm1551_vm1, %v1510_v21  ;;  %v1332_v22 = vmul.f32 %v2961_v6, %v1267_v37 }
 0x2ee   : > { %v897_v23 = vpop.f32.mrf.mxu3  ;;  %1434 = vadd.xlane.f32.xlu2 %v1332_v22 }
 0x2ef   : > { %v898_v50 = vadd.f32 %v2860_v2, %v897_v23  ;;  %v1166_v24 = vpop.f32.mrf.mxu2  ;;  %v2323_v30 = vpop.eup %2322 }
 0x2f0   : > { %v1167_v26 = vadd.f32 %v2952_v63, %v1166_v24 }
 0x2f1   : > { %2324 = vtanh.f32 %v898_v50  ;;  %v1407_v27 = vpop.xlane.xlu0 %1406 }
 0x2f2   : > { %v1268_v52 = vmax.f32 %v1167_v26, 0.0  ;;  %v1511_v28 = vadd.f32 %v2819_v61, %v1407_v27 }
 0x2f4   : > { %1576 = vst.msk [vmem:[%s2823_s12 + $0xc0] sm:$0xff] %vm1551_vm1, %v1511_v28  ;;  %v1333_v29 = vmul.f32 %v2961_v6, %v1268_v52 }
 0x2f6   : > { %v900_v25 = vpop.f32.mrf.mxu3  ;;  %1436 = vadd.xlane.f32.xlu0 %v1333_v29 }
 0x2f7   : > { %v2325_v31 = vpop.eup %2324  ;;  %v1169_v57 = vpop.f32.mrf.mxu2  ;;  %v901_v41 = vadd.f32 %v2860_v2, %v900_v25 }
 0x2f8   : > { %v1170_v32 = vadd.f32 %v2952_v63, %v1169_v57  ;;  %v1007_v34 = vpack.c.bf16 %v2325_v31, %v2323_v30 }
 0x2f9   : > { %v1409_v36 = vpop.xlane.xlu1 %1408  ;;  %2326 = vtanh.f32 %v901_v41 }
 0x2fa   : > { %v1269_v39 = vmax.f32 %v1170_v32, 0.0  ;;  %v1512_v40 = vadd.f32 %v2819_v61, %v1409_v36  ;;  %1208 = vmatmul.bf16.gmra.mxu3 %v1007_v34 }
 0x2fc   : > { %1577 = vst.msk [vmem:[%s2823_s12 + $0xc8] sm:$0xff] %vm1551_vm1, %v1512_v40  ;;  %v1334_v42 = vmul.f32 %v2961_v6, %v1269_v39 }
 0x2fe   : > { %v902_v44 = vpop.f32.mrf.mxu3  ;;  %1438 = vadd.xlane.f32.xlu1 %v1334_v42 }
 0x2ff   : > { %v903_v45 = vadd.f32 %v2860_v2, %v902_v44  ;;  %v1171_v46 = vpop.f32.mrf.mxu2  ;;  %v2327_v8 = vpop.eup %2326 }
 0x300   : > { %v1172_v47 = vadd.f32 %v2952_v63, %v1171_v46 }
 0x301   : > { %2328 = vtanh.f32 %v903_v45  ;;  %v1411_v49 = vpop.xlane.xlu2 %1410 }
 0x302   : > { %v1270_v51 = vmax.f32 %v1172_v47, 0.0  ;;  %v1513_v53 = vadd.f32 %v2819_v61, %v1411_v49 }
 0x304   : > { %1578 = vst.msk [vmem:[%s2823_s12 + $0xd0] sm:$0xff] %vm1551_vm1, %v1513_v53  ;;  %v1335_v54 = vmul.f32 %v2961_v6, %v1270_v51 }
 0x306   : > { %v905_v55 = vpop.f32.mrf.mxu3  ;;  %1440 = vadd.xlane.f32.xlu2 %v1335_v54 }
 0x307   : > { %v2329_v56 = vpop.eup %2328  ;;  %v1174_v58 = vpop.f32.mrf.mxu2  ;;  %v906_v3 = vadd.f32 %v2860_v2, %v905_v55 }
 0x308   : > { %v1175_v59 = vadd.f32 %v2952_v63, %v1174_v58  ;;  %v1008_v60 = vpack.c.bf16 %v2329_v56, %v2327_v8 }
 0x309   : > { %v1413_v62 = vpop.xlane.xlu0 %1412  ;;  %2330 = vtanh.f32 %v906_v3 }
 0x30a   : > { %v1271_v0 = vmax.f32 %v1175_v59, 0.0  ;;  %v1514_v1 = vadd.f32 %v2819_v61, %v1413_v62  ;;  %1213 = vmatmul.bf16.gmra.mxu3 %v1008_v60 }
 0x30c   : > { %1579 = vst.msk [vmem:[%s2823_s12 + $0xd8] sm:$0xff] %vm1551_vm1, %v1514_v1  ;;  %v1336_v4 = vmul.f32 %v2961_v6, %v1271_v0 }
 0x30e   : > { %v907_v33 = vpop.f32.mrf.mxu3  ;;  %1442 = vadd.xlane.f32.xlu0 %v1336_v4 }
 0x30f   : > { %v908_v5 = vadd.f32 %v2860_v2, %v907_v33  ;;  %v1176_v35 = vpop.f32.mrf.mxu2  ;;  %v2331_v12 = vpop.eup %2330 }
 0x310   : > { %v1177_v7 = vadd.f32 %v2952_v63, %v1176_v35 }
 0x311   : > { %2332 = vtanh.f32 %v908_v5  ;;  %v1415_v9 = vpop.xlane.xlu1 %1414 }
 0x312   : > { %v1272_v10 = vmax.f32 %v1177_v7, 0.0  ;;  %v1515_v11 = vadd.f32 %v2819_v61, %v1415_v9 }
 0x314   : > { %1580 = vst.msk [vmem:[%s2823_s12 + $0xe0] sm:$0xff] %vm1551_vm1, %v1515_v11  ;;  %v1337_v38 = vmul.f32 %v2961_v6, %v1272_v10 }
 0x316   : > { %v910_v13 = vpop.f32.mrf.mxu3  ;;  %1444 = vadd.xlane.f32.xlu1 %v1337_v38 }
 0x317   : > { %v2333_v43 = vpop.eup %2332  ;;  %v1179_v14 = vpop.f32.mrf.mxu2  ;;  %v911_v20 = vadd.f32 %v2860_v2, %v910_v13 }
 0x318   : > { %v1180_v15 = vadd.f32 %v2952_v63, %v1179_v14  ;;  %v1009_v16 = vpack.c.bf16 %v2333_v43, %v2331_v12 }
 0x319   : > { %v1417_v17 = vpop.xlane.xlu2 %1416  ;;  %2334 = vtanh.f32 %v911_v20  ;;  %v3078_v20 = vld [vmem:[%s3320_s2 + $0x4] ss:$0 sm:$0xff] }
 0x31a   : > { %v1273_v18 = vmax.f32 %v1180_v15, 0.0  ;;  %v1516_v19 = vadd.f32 %v2819_v61, %v1417_v17  ;;  %1218 = vmatmul.bf16.gmra.mxu3 %v1009_v16 }
 0x31c   : > { %1581 = vst.msk [vmem:[%s2823_s12 + $0xe8] sm:$0xff] %vm1551_vm1, %v1516_v19  ;;  %v1338_v37 = vmul.f32 %v2961_v6, %v1273_v18 }
 0x31e   : > { %v912_v21 = vpop.f32.mrf.mxu3  ;;  %1446 = vadd.xlane.f32.xlu2 %v1338_v37 }
 0x31f   : > { %v913_v48 = vadd.f32 %v2860_v2, %v912_v21  ;;  %v1181_v22 = vpop.f32.mrf.mxu2  ;;  %v2335_v52 = vpop.eup %2334 }
 0x320   : > { %v1182_v23 = vadd.f32 %v2952_v63, %v1181_v22 }
 0x321   : > { %2336 = vtanh.f32 %v913_v48  ;;  %v1419_v50 = vpop.xlane.xlu0 %1418 }
 0x322   : > { %v1274_v24 = vmax.f32 %v1182_v23, 0.0  ;;  %v1517_v26 = vadd.f32 %v2819_v61, %v1419_v50 }
 0x324   : > { %1582 = vst.msk [vmem:[%s2823_s12 + $0xf0] sm:$0xff] %vm1551_vm1, %v1517_v26  ;;  %v1339_v27 = vmul.f32 %v2961_v6, %v1274_v24 }
 0x326   : > { %1448 = vadd.xlane.f32.xlu0 %v1339_v27 }
 0x327   : > { %v2337_v28 = vpop.eup %2336  ;;  %v1184_v29 = vpop.f32.mrf.mxu2 }
 0x328   : > { %v1185_v2 = vadd.f32 %v2952_v63, %v1184_v29  ;;  %v1010_v30 = vpack.c.bf16 %v2337_v28, %v2335_v52 }
 0x329   : > { %v1421_v25 = vpop.xlane.xlu1 %1420 }
 0x32a   : > { %v1275_v31 = vmax.f32 %v1185_v2, 0.0  ;;  %v1518_v57 = vadd.f32 %v2819_v61, %v1421_v25  ;;  %1223 = vmatmul.bf16.gmra.mxu3 %v1010_v30 }
 0x32c   : > { %1583 = vst.msk [vmem:[%s2823_s12 + $0xf8] sm:$0xff] %vm1551_vm1, %v1518_v57  ;;  %v1340_v32 = vmul.f32 %v2961_v6, %v1275_v31 }
 0x32e   : > { %1450 = vadd.xlane.f32.xlu1 %v1340_v32 }
 0x32f   : > { %v1186_v34 = vpop.f32.mrf.mxu2 }
 0x330   : > { %v1187_v36 = vadd.f32 %v2952_v63, %v1186_v34 }
 0x331   : > { %v1423_v39 = vpop.xlane.xlu2 %1422 }
 0x332   : > { %v1276_v40 = vmax.f32 %v1187_v36, 0.0  ;;  %v1519_v41 = vadd.f32 %v2819_v61, %v1423_v39 }
 0x334   : > { %1584 = vst.msk [vmem:[%s2823_s12 + $0x100] sm:$0xff] %vm1551_vm1, %v1519_v41  ;;  %v1341_v42 = vmul.f32 %v2961_v6, %v1276_v40 }
 0x336   : > { %1452 = vadd.xlane.f32.xlu2 %v1341_v42 }
 0x339   : > { %v1425_v44 = vpop.xlane.xlu0 %1424 }
 0x33a   : > { %v1520_v45 = vadd.f32 %v2819_v61, %v1425_v44 }
 0x33c   : > { %1585 = vst.msk [vmem:[%s2823_s12 + $0x108] sm:$0xff] %vm1551_vm1, %v1520_v45 }
 0x33d   : > { %v1189_v46 = vpop.f32.mrf.mxu3 }
 0x33e   : > { %v1190_v47 = vadd.f32 %v2952_v63, %v1189_v46 }
 0x340   : > { %v1277_v49 = vmax.f32 %v1190_v47, 0.0 }
 0x341   : > { %v1427_v51 = vpop.xlane.xlu1 %1426 }
 0x342   : > { %v1521_v53 = vadd.f32 %v2819_v61, %v1427_v51  ;;  %v1342_v54 = vmul.f32 %v2961_v6, %v1277_v49 }
 0x344   : > { %1586 = vst.msk [vmem:[%s2823_s12 + $0x110] sm:$0xff] %vm1551_vm1, %v1521_v53  ;;  %1454 = vadd.xlane.f32.xlu0 %v1342_v54 }
 0x345   : > { %v1191_v8 = vpop.f32.mrf.mxu3 }
 0x346   : > { %v1192_v55 = vadd.f32 %v2952_v63, %v1191_v8 }
 0x348   : > { %v1278_v56 = vmax.f32 %v1192_v55, 0.0 }
 0x349   : > { %v1429_v58 = vpop.xlane.xlu2 %1428 }
 0x34a   : > { %v1522_v59 = vadd.f32 %v2819_v61, %v1429_v58  ;;  %v1343_v60 = vmul.f32 %v2961_v6, %v1278_v56 }
 0x34c   : > { %1587 = vst.msk [vmem:[%s2823_s12 + $0x118] sm:$0xff] %vm1551_vm1, %v1522_v59  ;;  %1456 = vadd.xlane.f32.xlu1 %v1343_v60 }
 0x34d   : > { %v1194_v62 = vpop.f32.mrf.mxu3 }
 0x34e   : > { %v1195_v0 = vadd.f32 %v2952_v63, %v1194_v62 }
 0x350   : > { %v1279_v1 = vmax.f32 %v1195_v0, 0.0 }
 0x351   : > { %v1431_v3 = vpop.xlane.xlu0 %1430 }
 0x352   : > { %v1523_v4 = vadd.f32 %v2819_v61, %v1431_v3  ;;  %v1344_v33 = vmul.f32 %v2961_v6, %v1279_v1 }
 0x354   : > { %1588 = vst.msk [vmem:[%s2823_s12 + $0x120] sm:$0xff] %vm1551_vm1, %v1523_v4  ;;  %1458 = vadd.xlane.f32.xlu2 %v1344_v33 }
 0x355   : > { %v1196_v5 = vpop.f32.mrf.mxu3 }
 0x356   : > { %v1197_v35 = vadd.f32 %v2952_v63, %v1196_v5 }
 0x358   : > { %v1280_v7 = vmax.f32 %v1197_v35, 0.0 }
 0x359   : > { %v1433_v9 = vpop.xlane.xlu1 %1432 }
 0x35a   : > { %v1524_v10 = vadd.f32 %v2819_v61, %v1433_v9  ;;  %v1345_v11 = vmul.f32 %v2961_v6, %v1280_v7 }
 0x35c   : > { %1589 = vst.msk [vmem:[%s2823_s12 + $0x128] sm:$0xff] %vm1551_vm1, %v1524_v10  ;;  %1460 = vadd.xlane.f32.xlu0 %v1345_v11 }
 0x35d   : > { %v1199_v38 = vpop.f32.mrf.mxu3 }
 0x35e   : > { %v1200_v12 = vadd.f32 %v2952_v63, %v1199_v38 }
 0x360   : > { %v1281_v13 = vmax.f32 %v1200_v12, 0.0 }
 0x361   : > { %v1435_v43 = vpop.xlane.xlu2 %1434 }
 0x362   : > { %v1525_v14 = vadd.f32 %v2819_v61, %v1435_v43  ;;  %v1346_v15 = vmul.f32 %v2961_v6, %v1281_v13 }
 0x364   : > { %1590 = vst.msk [vmem:[%s2823_s12 + $0x130] sm:$0xff] %vm1551_vm1, %v1525_v14  ;;  %1462 = vadd.xlane.f32.xlu1 %v1346_v15 }
 0x365   : > { %v1201_v16 = vpop.f32.mrf.mxu3 }
 0x366   : > { %v1202_v17 = vadd.f32 %v2952_v63, %v1201_v16 }
 0x368   : > { %v1282_v18 = vmax.f32 %v1202_v17, 0.0 }
 0x369   : > { %v1437_v19 = vpop.xlane.xlu0 %1436 }
 0x36a   : > { %v1526_v37 = vadd.f32 %v3078_v20, %v1437_v19  ;;  %v1347_v61 = vmul.f32 %v2961_v6, %v1282_v18 }
 0x36c   : > { %1591 = vst.msk [vmem:[%s2823_s12 + $0x138] sm:$0xff] %vm1551_vm1, %v1526_v37  ;;  %1464 = vadd.xlane.f32.xlu2 %v1347_v61 }
 0x36d   : > { %v1204_v21 = vpop.f32.mrf.mxu3 }
 0x36e   : > { %v1205_v48 = vadd.f32 %v2952_v63, %v1204_v21 }
 0x370   : > { %v1283_v22 = vmax.f32 %v1205_v48, 0.0 }
 0x371   : > { %v1439_v23 = vpop.xlane.xlu1 %1438 }
 0x372   : > { %v1527_v50 = vadd.f32 %v3078_v20, %v1439_v23  ;;  %v1348_v24 = vmul.f32 %v2961_v6, %v1283_v22 }
 0x374   : > { %1592 = vst.msk [vmem:[%s2823_s12 + $0x140] sm:$0xff] %vm1551_vm1, %v1527_v50  ;;  %1466 = vadd.xlane.f32.xlu0 %v1348_v24 }
 0x375   : > { %v1206_v26 = vpop.f32.mrf.mxu3 }
 0x376   : > { %v1207_v27 = vadd.f32 %v2952_v63, %v1206_v26 }
 0x378   : > { %v1284_v52 = vmax.f32 %v1207_v27, 0.0 }
 0x379   : > { %v1441_v28 = vpop.xlane.xlu2 %1440 }
 0x37a   : > { %v1528_v29 = vadd.f32 %v3078_v20, %v1441_v28  ;;  %v1349_v2 = vmul.f32 %v2961_v6, %v1284_v52 }
 0x37c   : > { %1593 = vst.msk [vmem:[%s2823_s12 + $0x148] sm:$0xff] %vm1551_vm1, %v1528_v29  ;;  %1468 = vadd.xlane.f32.xlu1 %v1349_v2 }
 0x37d   : > { %v1209_v30 = vpop.f32.mrf.mxu3 }
 0x37e   : > { %v1210_v25 = vadd.f32 %v2952_v63, %v1209_v30 }
 0x380   : > { %v1285_v31 = vmax.f32 %v1210_v25, 0.0 }
 0x381   : > { %v1443_v57 = vpop.xlane.xlu0 %1442 }
 0x382   : > { %v1529_v32 = vadd.f32 %v3078_v20, %v1443_v57  ;;  %v1350_v34 = vmul.f32 %v2961_v6, %v1285_v31 }
 0x384   : > { %1594 = vst.msk [vmem:[%s2823_s12 + $0x150] sm:$0xff] %vm1551_vm1, %v1529_v32  ;;  %1470 = vadd.xlane.f32.xlu2 %v1350_v34 }
 0x385   : > { %v1211_v36 = vpop.f32.mrf.mxu3 }
 0x386   : > { %v1212_v39 = vadd.f32 %v2952_v63, %v1211_v36 }
 0x388   : > { %v1286_v40 = vmax.f32 %v1212_v39, 0.0 }
 0x389   : > { %v1445_v41 = vpop.xlane.xlu1 %1444 }
 0x38a   : > { %v1530_v42 = vadd.f32 %v3078_v20, %v1445_v41  ;;  %v1351_v44 = vmul.f32 %v2961_v6, %v1286_v40 }
 0x38c   : > { %1595 = vst.msk [vmem:[%s2823_s12 + $0x158] sm:$0xff] %vm1551_vm1, %v1530_v42  ;;  %1472 = vadd.xlane.f32.xlu0 %v1351_v44 }
 0x38d   : > { %v1214_v45 = vpop.f32.mrf.mxu3 }
 0x38e   : > { %v1215_v46 = vadd.f32 %v2952_v63, %v1214_v45 }
 0x390   : > { %v1287_v47 = vmax.f32 %v1215_v46, 0.0 }
 0x391   : > { %v1447_v49 = vpop.xlane.xlu2 %1446 }
 0x392   : > { %v1531_v51 = vadd.f32 %v3078_v20, %v1447_v49  ;;  %v1352_v53 = vmul.f32 %v2961_v6, %v1287_v47 }
 0x394   : > { %1596 = vst.msk [vmem:[%s2823_s12 + $0x160] sm:$0xff] %vm1551_vm1, %v1531_v51  ;;  %1474 = vadd.xlane.f32.xlu1 %v1352_v53 }
 0x395   : > { %v1216_v54 = vpop.f32.mrf.mxu3 }
 0x396   : > { %v1217_v8 = vadd.f32 %v2952_v63, %v1216_v54 }
 0x398   : > { %v1288_v55 = vmax.f32 %v1217_v8, 0.0 }
 0x399   : > { %v1449_v56 = vpop.xlane.xlu0 %1448 }
 0x39a   : > { %v1532_v58 = vadd.f32 %v3078_v20, %v1449_v56  ;;  %v1353_v59 = vmul.f32 %v2961_v6, %v1288_v55 }
 0x39c   : > { %1597 = vst.msk [vmem:[%s2823_s12 + $0x168] sm:$0xff] %vm1551_vm1, %v1532_v58  ;;  %1476 = vadd.xlane.f32.xlu2 %v1353_v59 }
 0x39d   : > { %v1219_v60 = vpop.f32.mrf.mxu3 }
 0x39e   : > { %v1220_v62 = vadd.f32 %v2952_v63, %v1219_v60 }
 0x3a0   : > { %v1289_v0 = vmax.f32 %v1220_v62, 0.0 }
 0x3a1   : > { %v1451_v1 = vpop.xlane.xlu1 %1450 }
 0x3a2   : > { %v1533_v3 = vadd.f32 %v3078_v20, %v1451_v1  ;;  %v1354_v4 = vmul.f32 %v2961_v6, %v1289_v0 }
 0x3a4   : > { %1598 = vst.msk [vmem:[%s2823_s12 + $0x170] sm:$0xff] %vm1551_vm1, %v1533_v3  ;;  %1478 = vadd.xlane.f32.xlu0 %v1354_v4 }
 0x3a5   : > { %v1221_v33 = vpop.f32.mrf.mxu3 }
 0x3a6   : > { %v1222_v5 = vadd.f32 %v2952_v63, %v1221_v33 }
 0x3a8   : > { %v1290_v35 = vmax.f32 %v1222_v5, 0.0 }
 0x3a9   : > { %v1453_v7 = vpop.xlane.xlu2 %1452 }
 0x3aa   : > { %v1534_v9 = vadd.f32 %v3078_v20, %v1453_v7  ;;  %v1355_v10 = vmul.f32 %v2961_v6, %v1290_v35 }
 0x3ac   : > { %1599 = vst.msk [vmem:[%s2823_s12 + $0x178] sm:$0xff] %vm1551_vm1, %v1534_v9  ;;  %1480 = vadd.xlane.f32.xlu1 %v1355_v10 }
 0x3ad   : > { %v1224_v11 = vpop.f32.mrf.mxu3 }
 0x3ae   : > { %v1225_v38 = vadd.f32 %v2952_v63, %v1224_v11 }
 0x3b0   : > { %v1291_v12 = vmax.f32 %v1225_v38, 0.0 }
 0x3b2   : > { %v1356_v13 = vmul.f32 %v2961_v6, %v1291_v12 }
 0x3b4   : > { %1482 = vadd.xlane.f32.xlu2 %v1356_v13 }
 0x3b5   : > { %v1226_v43 = vpop.f32.mrf.mxu3 }
 0x3b6   : > { %v1227_v14 = vadd.f32 %v2952_v63, %v1226_v43 }
 0x3b7   : > { %v1455_v15 = vpop.xlane.xlu0 %1454 }
 0x3b8   : > { %v1292_v16 = vmax.f32 %v1227_v14, 0.0  ;;  %v1535_v17 = vadd.f32 %v3078_v20, %v1455_v15 }
 0x3ba   : > { %1600 = vst.msk [vmem:[%s2823_s12 + $0x180] sm:$0xff] %vm1551_vm1, %v1535_v17  ;;  %v1357_v18 = vmul.f32 %v2961_v6, %v1292_v16 }
 0x3bc   : > { %1484 = vadd.xlane.f32.xlu0 %v1357_v18 }
 0x3bf   : > { %v1457_v19 = vpop.xlane.xlu1 %1456 }
 0x3c0   : > { %v1536_v37 = vadd.f32 %v3078_v20, %v1457_v19 }
 0x3c2   : > { %1601 = vst.msk [vmem:[%s2823_s12 + $0x188] sm:$0xff] %vm1551_vm1, %v1536_v37 }
 0x3c7   : > { %v1459_v61 = vpop.xlane.xlu2 %1458 }
 0x3c8   : > { %v1537_v63 = vadd.f32 %v3078_v20, %v1459_v61 }
 0x3ca   : > { %1602 = vst.msk [vmem:[%s2823_s12 + $0x190] sm:$0xff] %vm1551_vm1, %v1537_v63 }
 0x3cf   : > { %v1461_v21 = vpop.xlane.xlu0 %1460 }
 0x3d0   : > { %v1538_v48 = vadd.f32 %v3078_v20, %v1461_v21 }
 0x3d2   : > { %1603 = vst.msk [vmem:[%s2823_s12 + $0x198] sm:$0xff] %vm1551_vm1, %v1538_v48 }
 0x3d7   : > { %v1463_v6 = vpop.xlane.xlu1 %1462 }
 0x3d8   : > { %v1539_v22 = vadd.f32 %v3078_v20, %v1463_v6 }
 0x3da   : > { %1604 = vst.msk [vmem:[%s2823_s12 + $0x1a0] sm:$0xff] %vm1551_vm1, %v1539_v22 }
 0x3df   : > { %v1465_v23 = vpop.xlane.xlu2 %1464 }
 0x3e0   : > { %v1540_v50 = vadd.f32 %v3078_v20, %v1465_v23 }
 0x3e2   : > { %1605 = vst.msk [vmem:[%s2823_s12 + $0x1a8] sm:$0xff] %vm1551_vm1, %v1540_v50 }
 0x3e7   : > { %v1467_v24 = vpop.xlane.xlu0 %1466 }
 0x3e8   : > { %v1541_v26 = vadd.f32 %v3078_v20, %v1467_v24 }
 0x3ea   : > { %1606 = vst.msk [vmem:[%s2823_s12 + $0x1b0] sm:$0xff] %vm1551_vm1, %v1541_v26 }
 0x3ef   : > { %v1469_v27 = vpop.xlane.xlu1 %1468 }
 0x3f0   : > { %v1542_v52 = vadd.f32 %v3078_v20, %v1469_v27 }
 0x3f2   : > { %1607 = vst.msk [vmem:[%s2823_s12 + $0x1b8] sm:$0xff] %vm1551_vm1, %v1542_v52 }
 0x3f7   : > { %v1471_v28 = vpop.xlane.xlu2 %1470 }
 0x3f8   : > { %v1543_v29 = vadd.f32 %v3078_v20, %v1471_v28 }
 0x3fa   : > { %1608 = vst.msk [vmem:[%s2823_s12 + $0x1c0] sm:$0xff] %vm1551_vm1, %v1543_v29 }
 0x3ff   : > { %v1473_v2 = vpop.xlane.xlu0 %1472 }
 0x400   : > { %v1544_v30 = vadd.f32 %v3078_v20, %v1473_v2 }
 0x402   : > { %1609 = vst.msk [vmem:[%s2823_s12 + $0x1c8] sm:$0xff] %vm1551_vm1, %v1544_v30 }
 0x407   : > { %v1475_v25 = vpop.xlane.xlu1 %1474 }
 0x408   : > { %v1545_v31 = vadd.f32 %v3078_v20, %v1475_v25 }
 0x40a   : > { %1610 = vst.msk [vmem:[%s2823_s12 + $0x1d0] sm:$0xff] %vm1551_vm1, %v1545_v31 }
 0x40f   : > { %v1477_v57 = vpop.xlane.xlu2 %1476 }
 0x410   : > { %v1546_v32 = vadd.f32 %v3078_v20, %v1477_v57 }
 0x412   : > { %1611 = vst.msk [vmem:[%s2823_s12 + $0x1d8] sm:$0xff] %vm1551_vm1, %v1546_v32 }
 0x417   : > { %v1479_v34 = vpop.xlane.xlu0 %1478 }
 0x418   : > { %v1547_v36 = vadd.f32 %v3078_v20, %v1479_v34 }
 0x41a   : > { %1612 = vst.msk [vmem:[%s2823_s12 + $0x1e0] sm:$0xff] %vm1551_vm1, %v1547_v36 }
 0x41f   : > { %v1481_v39 = vpop.xlane.xlu1 %1480 }
 0x420   : > { %v1548_v40 = vadd.f32 %v3078_v20, %v1481_v39 }
 0x422   : > { %1613 = vst.msk [vmem:[%s2823_s12 + $0x1e8] sm:$0xff] %vm1551_vm1, %v1548_v40 }
 0x427   : > { %v1483_v41 = vpop.xlane.xlu2 %1482 }
 0x428   : > { %v1549_v42 = vadd.f32 %v3078_v20, %v1483_v41 }
 0x42a   : > { %1614 = vst.msk [vmem:[%s2823_s12 + $0x1f0] sm:$0xff] %vm1551_vm1, %v1549_v42 }
 0x42e   : > { %1622 = sbr.rel (!%p2476_p4) target bundleno = 1139 (0x473), region = 36 }
 0x42f   : > { %v1485_v44 = vpop.xlane.xlu0 %1484 }
 0x430   : > { %v1550_v45 = vadd.f32 %v3078_v20, %v1485_v44 }
 0x432   : > { %1615 = vst.msk [vmem:[%s2823_s12 + $0x1f8] sm:$0xff] %vm1551_vm1, %v1550_v45 }
 0x433   : > { %s3332_s24 = smov (!%p1625_p8, %s1624_s24), 64 }
 0x434   : > { %s2065_s30 = sshll.u32 %s3332_s24, 3 }
 0x435   : > { %p2068_p9 = scmp.eq.s32.totalorder %s2065_s30, 0 }
 0x436   : > { %s3189_s28 = sshrl.u32 (!%p2068_p9), %s3332_s24, 5 }
 0x437   : > { %1633 = sbr.rel (%p2068_p9) target bundleno = 1139 (0x473), region = 40  ;;  %p2069_p10 = scmp.le.s32.totalorder (!%p2068_p9), %s3189_s28, 0 }
 0x43c   : > { %1912 = sbr.rel (%p2069_p10) target bundleno = 1122 (0x462), region = 116  ;;  %s3323_s15 = smov (!%p2069_p10), %s3183_s29 }
 0x43d   : > { %s3324_s20 = smov (!%p2069_p10), %s2823_s12  ;;  %s3198_s23 = smov (!%p2069_p10), 0  }
 0x43e   : > { %s3200_s4 = smov (!%p2069_p10), 0  }
 0x441 LB: >> { %v1758_v20 = vld [vmem:[%s2405_s20] sm:$0xff]  ;;  %v1760_v46 = vld [vmem:[%s2405_s20 + $0x8] sm:$0xff]  ;;  %v1762_v47 = vld [vmem:[%s2405_s20 + $0x10] sm:$0xff]  ;;  %s1822_s5 = sadd.s32 1, %s2409_s23  ;;  %s1752_s4 = sadd.s32 1, %s2413_s4   ;;  %s2413_s4 = sphi %s3200_s4, %s1752_s4   ;;  %s2409_s23 = sphi %s3198_s23, %s3327_s23   ;;  %s2405_s20 = sphi %s3324_s20, %s3326_s20   ;;  %s2401_s15 = sphi %s3323_s15, %s3325_s15  }
 0x442   : >> { %1759 = vst [vmem:[%s2401_s15] sm:$0xff] %v1758_v20  ;;  %v1764_v49 = vld [vmem:[%s2405_s20 + $0x18] sm:$0xff]  ;;  %p1823_p11 = scmp.ge.s32.totalorder %s1822_s5, %s3189_s28  ;;  %v1766_v51 = vld [vmem:[%s2405_s20 + $0x20] sm:$0xff]  ;;  %v1768_v53 = vld [vmem:[%s2405_s20 + $0x28] sm:$0xff]  ;;  %p1751_p12 = scmp.ge.s32.totalorder %s1752_s4, %s3189_s28 }
 0x443   : >> { %1761 = vst [vmem:[%s2401_s15 + $0x8] sm:$0xff] %v1760_v46  ;;  %v1770_v54 = vld [vmem:[%s2405_s20 + $0x30] sm:$0xff]  ;;  %v1772_v8 = vld [vmem:[%s2405_s20 + $0x38] sm:$0xff]  ;;  %v1774_v55 = vld [vmem:[%s2405_s20 + $0x40] sm:$0xff] }
 0x444   : >> { %1763 = vst [vmem:[%s2401_s15 + $0x10] sm:$0xff] %v1762_v47  ;;  %s3334_s5 = smov (%p1823_p11, %s1822_s5), 0  ;;  %v1776_v56 = vld [vmem:[%s2405_s20 + $0x48] sm:$0xff]  ;;  %v1778_v58 = vld [vmem:[%s2405_s20 + $0x50] sm:$0xff]  ;;  %v1780_v59 = vld [vmem:[%s2405_s20 + $0x58] sm:$0xff] }
 0x445   : >> { %1765 = vst [vmem:[%s2401_s15 + $0x18] sm:$0xff] %v1764_v49  ;;  %s2070_s6 = sshll.u32 %s3334_s5, 8  ;;  %v1782_v60 = vld [vmem:[%s2405_s20 + $0x60] sm:$0xff]  ;;  %v1784_v62 = vld [vmem:[%s2405_s20 + $0x68] sm:$0xff]  ;;  %v1786_v0 = vld [vmem:[%s2405_s20 + $0x70] sm:$0xff]  ;;  %s3327_s23 = smov %s3334_s5 }
 0x446   : >> { %1767 = vst [vmem:[%s2401_s15 + $0x20] sm:$0xff] %v1766_v51  ;;  %s3232_s7 = scalar_lea.vmem %s2823_s12, %s2070_s6 [#allocation2]   ;;  %s3235_s8 = scalar_lea.vmem %s3183_s29, %s2070_s6   ;;  %v1788_v1 = vld [vmem:[%s2405_s20 + $0x78] sm:$0xff]  ;;  %v1790_v3 = vld [vmem:[%s2405_s20 + $0x80] sm:$0xff]  ;;  %v1792_v4 = vld [vmem:[%s2405_s20 + $0x88] sm:$0xff] }
 0x447   : >> { %1769 = vst [vmem:[%s2401_s15 + $0x28] sm:$0xff] %v1768_v53  ;;  %v1794_v33 = vld [vmem:[%s2405_s20 + $0x90] sm:$0xff]  ;;  %v1796_v5 = vld [vmem:[%s2405_s20 + $0x98] sm:$0xff]  ;;  %v1798_v35 = vld [vmem:[%s2405_s20 + $0xa0] sm:$0xff] }
 0x448   : >> { %1771 = vst [vmem:[%s2401_s15 + $0x30] sm:$0xff] %v1770_v54  ;;  %v1800_v7 = vld [vmem:[%s2405_s20 + $0xa8] sm:$0xff]  ;;  %v1802_v9 = vld [vmem:[%s2405_s20 + $0xb0] sm:$0xff]  ;;  %v1804_v10 = vld [vmem:[%s2405_s20 + $0xb8] sm:$0xff] }
 0x449   : >> { %1773 = vst [vmem:[%s2401_s15 + $0x38] sm:$0xff] %v1772_v8  ;;  %v1806_v11 = vld [vmem:[%s2405_s20 + $0xc0] sm:$0xff]  ;;  %v1808_v38 = vld [vmem:[%s2405_s20 + $0xc8] sm:$0xff]  ;;  %v1810_v12 = vld [vmem:[%s2405_s20 + $0xd0] sm:$0xff] }
 0x44a   : >> { %1775 = vst [vmem:[%s2401_s15 + $0x40] sm:$0xff] %v1774_v55  ;;  %v1812_v13 = vld [vmem:[%s2405_s20 + $0xd8] sm:$0xff]  ;;  %v1814_v43 = vld [vmem:[%s2405_s20 + $0xe0] sm:$0xff]  ;;  %v1816_v14 = vld [vmem:[%s2405_s20 + $0xe8] sm:$0xff] }
 0x44b   : >> { %1777 = vst [vmem:[%s2401_s15 + $0x48] sm:$0xff] %v1776_v56  ;;  %v1818_v15 = vld [vmem:[%s2405_s20 + $0xf0] sm:$0xff]  ;;  %v1820_v16 = vld [vmem:[%s2405_s20 + $0xf8] sm:$0xff]  ;;  %s3326_s20 = smov %s3232_s7 }
 0x44c   : >> { %1779 = vst [vmem:[%s2401_s15 + $0x50] sm:$0xff] %v1778_v58 }
 0x44d   : >> { %1781 = vst [vmem:[%s2401_s15 + $0x58] sm:$0xff] %v1780_v59 }
 0x44e   : >> { %1783 = vst [vmem:[%s2401_s15 + $0x60] sm:$0xff] %v1782_v60 }
 0x44f   : >> { %1785 = vst [vmem:[%s2401_s15 + $0x68] sm:$0xff] %v1784_v62 }
 0x450   : >> { %1787 = vst [vmem:[%s2401_s15 + $0x70] sm:$0xff] %v1786_v0 }
 0x451   : >> { %1789 = vst [vmem:[%s2401_s15 + $0x78] sm:$0xff] %v1788_v1 }
 0x452   : >> { %1791 = vst [vmem:[%s2401_s15 + $0x80] sm:$0xff] %v1790_v3 }
 0x453   : >> { %1793 = vst [vmem:[%s2401_s15 + $0x88] sm:$0xff] %v1792_v4 }
 0x454   : >> { %1795 = vst [vmem:[%s2401_s15 + $0x90] sm:$0xff] %v1794_v33 }
 0x455   : >> { %1797 = vst [vmem:[%s2401_s15 + $0x98] sm:$0xff] %v1796_v5 }
 0x456   : >> { %1799 = vst [vmem:[%s2401_s15 + $0xa0] sm:$0xff] %v1798_v35 }
 0x457   : >> { %1801 = vst [vmem:[%s2401_s15 + $0xa8] sm:$0xff] %v1800_v7 }
 0x458   : >> { %1803 = vst [vmem:[%s2401_s15 + $0xb0] sm:$0xff] %v1802_v9 }
 0x459   : >> { %1805 = vst [vmem:[%s2401_s15 + $0xb8] sm:$0xff] %v1804_v10 }
 0x45a   : >> { %1807 = vst [vmem:[%s2401_s15 + $0xc0] sm:$0xff] %v1806_v11 }
 0x45b   : >> { %1809 = vst [vmem:[%s2401_s15 + $0xc8] sm:$0xff] %v1808_v38 }
 0x45c   : >> { %1811 = vst [vmem:[%s2401_s15 + $0xd0] sm:$0xff] %v1810_v12 }
 0x45d   : >> { %1813 = vst [vmem:[%s2401_s15 + $0xd8] sm:$0xff] %v1812_v13  ;;  %1754 = sbr.rel (!%p1751_p12) target bundleno = 1089 (0x441), region = 122 }
 0x45e   : >> { %1815 = vst [vmem:[%s2401_s15 + $0xe0] sm:$0xff] %v1814_v43 }
 0x45f   : >> { %1817 = vst [vmem:[%s2401_s15 + $0xe8] sm:$0xff] %v1816_v14 }
 0x460   : >> { %1819 = vst [vmem:[%s2401_s15 + $0xf0] sm:$0xff] %v1818_v15 }
 0x461   : >> { %1821 = vst [vmem:[%s2401_s15 + $0xf8] sm:$0xff] %v1820_v16  ;;  %s3325_s15 = smov %s3235_s8 }
 0x462 PF: > { %s3300_s9 = sand.u32 31, %s3332_s24   ;;  %s2098_s10 = sshll.u32 %s3189_s28, 8 }
 0x463   : > { %s1833_s11 = scalar_lea.vmem %s2823_s12, %s2098_s10 [#allocation2]   ;;  %s1835_s14 = scalar_lea.vmem %s3183_s29, %s2098_s10  }
 0x464   : > { %p2075_p13 = scmp.le.s32.totalorder %s3300_s9, 0 }
 0x465   : > { %s2415_s17 = smov (!%p2075_p13), %s1835_s14   ;;  %s2419_s18 = smov (!%p2075_p13), %s1833_s11  }
 0x466   : > { %1926 = sbr.rel (%p2075_p13) target bundleno = 1139 (0x473), region = 127  ;;  %s2423_s21 = smov (!%p2075_p13), 0  }
 0x467   : > { %s2427_s22 = smov (!%p2075_p13), 0  }
 0x46b LB: >> { %v1845_v17 = vld [vmem:[%s2421_s18] sm:$0xff]  ;;  %s1847_s24 = sadd.s32 1, %s2425_s21  ;;  %s1839_s22 = sadd.s32 1, %s2429_s22   ;;  %s2429_s22 = sphi %s2427_s22, %s1839_s22   ;;  %s2425_s21 = sphi %s2423_s21, %s2424_s21   ;;  %s2421_s18 = sphi %s2419_s18, %s1852_s18   ;;  %s2417_s17 = sphi %s2415_s17, %s1853_s17  }
 0x46c   : >> { %1846 = vst [vmem:[%s2417_s17] sm:$0xff] %v1845_v17  ;;  %p1848_p0 = scmp.ge.s32.totalorder %s1847_s24, %s3300_s9  ;;  %p1838_p1 = scmp.ge.s32.totalorder %s1839_s22, %s3300_s9 }
 0x46e   : >> { %s3336_s24 = smov (%p1848_p0, %s1847_s24), 0  ;;  %1841 = sbr.rel (!%p1838_p1) target bundleno = 1131 (0x46b), region = 133 }
 0x46f   : >> { %s2076_s12 = sshll.u32 %s3336_s24, 3  ;;  %s2424_s21 = smov %s3336_s24  }
 0x470   : >> { %s1852_s18 = scalar_lea.vmem %s1833_s11, %s2076_s12 [#allocation2]   ;;  %s1853_s17 = scalar_lea.vmem %s1835_s14, %s2076_s12  }
 0x473 PF: > { %p10_p2 = scmp.ge.s32.totalorder %s2466_s16, 4   ;;  %s3328_s12 = smov %s2393_s13 }
 0x474   : > { %s3329_s13 = smov %s2474_s19  ;;  %s3330_s14 = smov %s2466_s16 }
 0x475   :  { %12 = sbr.rel (!%p10_p2) target bundleno = 2 (0x2), region = 144 }

</bundles_post_ra>
